<compile_context>
chip_gen: v6e
topology: v6e:2x2x1
jax: 0.10.0
libtpu: 0.0.40
codegen_flags: <defaults>
</compile_context>

<pallas_src>
import jax
import jax.numpy as jnp
from jax.experimental import pallas as pl
from jax.experimental.pallas import tpu as pltpu


# ----------------------------------------------------------------------------
# Fused kernel: layer-1 LSTM -> layer-2 LSTM (wavefronted) -> FC head.
# Wrapper pre-transposes/pre-flattens inputs:
#   x_ref    : (T*Bp, I)    time-major rows, batch padded to Bp (mult of 8)
#   wih1_ref : (I, 4H)      W_ih^T layer 1, gate cols ordered (i, f, o, g)
#   whh1_ref : (H, 4H)      W_hh^T layer 1, same gate order
#   b1_ref   : (1, 4H)      b_ih + b_hh layer 1
#   w2_ref   : (2H, 4H)     [W_ih2^T ; W_hh2^T] stacked, same gate order
#   b2_ref   : (1, 4H)
#   wfc_ref  : (T*H, O)     FC weight^T (feature index = t*H + h)
#   bfc_ref  : (1, O)
#   out_ref  : (Bp, O)
#   gx1_scr  : (T*Bp, 4H)   VMEM scratch: hoisted layer-1 input projection
#   h2_scr   : (Bp, T*H)    VMEM scratch: layer-2 hidden sequence for the FC
# ----------------------------------------------------------------------------
def _fused_lstm_fc_kernel(x_ref, wih1_ref, whh1_ref, b1_ref,
                          w2_ref, b2_ref, wfc_ref, bfc_ref,
                          out_ref, gx1_scr, h2_scr):
    TB = x_ref.shape[0]
    H = whh1_ref.shape[0]
    T = wfc_ref.shape[0] // H
    Bp = TB // T
    H3 = 3 * H

    # Hoisted layer-1 input projection: one MXU call for all T steps (f32,
    # off the serial recurrence), materialised to VMEM scratch.
    gx1_scr[...] = (jnp.dot(x_ref[...], wih1_ref[...],
                            preferred_element_type=jnp.float32)
                    + b1_ref[...])

    # Load weights once; cast to bf16 (native MXU input) outside the loop.
    whh1 = whh1_ref[...].astype(jnp.bfloat16)
    w2 = w2_ref[...].astype(jnp.bfloat16)
    b2 = b2_ref[...]

    h1 = jnp.zeros((Bp, H), jnp.float32)
    c1 = jnp.zeros((Bp, H), jnp.float32)
    h2 = jnp.zeros((Bp, H), jnp.float32)
    c2 = jnp.zeros((Bp, H), jnp.float32)

    def lstm_gates(g):
        # gate order (i, f, o, g): one sigmoid over 3H contiguous lanes.
        s = jax.nn.sigmoid(g[:, :H3])
        return s[:, 0:H], s[:, H:2 * H], s[:, 2 * H:H3], jnp.tanh(g[:, H3:])

    for t in range(T):  # fully unrolled: T is small and static
        # ---- layer-1 step t ------------------------------------------------
        g1 = gx1_scr[t * Bp:(t + 1) * Bp, :] + jnp.dot(
            h1.astype(jnp.bfloat16), whh1, preferred_element_type=jnp.float32)
        i1, f1, o1, gg1 = lstm_gates(g1)
        c1 = f1 * c1 + i1 * gg1
        h1 = o1 * jnp.tanh(c1)

        # ---- layer-2 step t (wavefront: depends only on h1_t, h2_{t-1}) ----
        hcat = jnp.concatenate([h1, h2], axis=1).astype(jnp.bfloat16)  # (Bp,2H)
        g2 = jnp.dot(hcat, w2, preferred_element_type=jnp.float32) + b2
        i2, f2, o2, gg2 = lstm_gates(g2)
        c2 = f2 * c2 + i2 * gg2
        h2 = o2 * jnp.tanh(c2)
        h2_scr[:, t * H:(t + 1) * H] = h2

    # FC head: one matmul over the stored layer-2 sequence, single store.
    out_ref[...] = (jnp.dot(h2_scr[...], wfc_ref[...],
                            preferred_element_type=jnp.float32)
                    + bfc_ref[...])


def _fused_forward_call(x_rows, wih1, whh1, b1, w2, b2, wfc, bfc):
    TB, I = x_rows.shape
    H = whh1.shape[0]
    TH, O = wfc.shape
    T = TH // H
    Bp = TB // T
    return pl.pallas_call(
        _fused_lstm_fc_kernel,
        out_shape=jax.ShapeDtypeStruct((Bp, O), jnp.float32),
        grid_spec=pltpu.PrefetchScalarGridSpec(
            num_scalar_prefetch=0,
            grid=(1,),
            in_specs=[
                pl.BlockSpec((TB, I), lambda i: (0, 0)),
                pl.BlockSpec((I, 4 * H), lambda i: (0, 0)),
                pl.BlockSpec((H, 4 * H), lambda i: (0, 0)),
                pl.BlockSpec((1, 4 * H), lambda i: (0, 0)),
                pl.BlockSpec((2 * H, 4 * H), lambda i: (0, 0)),
                pl.BlockSpec((1, 4 * H), lambda i: (0, 0)),
                pl.BlockSpec((TH, O), lambda i: (0, 0)),
                pl.BlockSpec((1, O), lambda i: (0, 0)),
            ],
            out_specs=pl.BlockSpec((Bp, O), lambda i: (0, 0)),
            scratch_shapes=[
                pltpu.VMEM((TB, 4 * H), jnp.float32),   # gx1 (hoisted proj)
                pltpu.VMEM((Bp, TH), jnp.float32),      # layer-2 hidden seq
            ],
        ),
        compiler_params=pltpu.CompilerParams(
            dimension_semantics=("arbitrary",)),
    )(x_rows, wih1, whh1, b1, w2, b2, wfc, bfc)


# ----------------------------------------------------------------------------
# Model params: mirrors the PyTorch LSTM module (num_layers == 2).
# Weights are stored pre-transposed and with gate columns permuted from
# PyTorch's (i, f, g, o) to the kernel's (i, f, o, g) order; layer-2's
# input/recurrent weights are pre-stacked into one (2H, 4H) matrix.
# ----------------------------------------------------------------------------
def init_params(key, input_size, hidden_size, num_layers, sequence_length,
                output_sequence):
    assert num_layers == 2, "kernel is specialised for the module's num_layers=2"
    H = hidden_size

    def perm_gates(w):  # rows ordered (i,f,g,o) -> (i,f,o,g)
        i_, f_, g_, o_ = jnp.split(w, 4, axis=0)
        return jnp.concatenate([i_, f_, o_, g_], axis=0)

    def lstm_layer(k, in_sz):
        k1, k2, k3, k4 = jax.random.split(k, 4)
        scale = 1.0 / jnp.sqrt(H)
        w_ih = jax.random.uniform(k1, (4 * H, in_sz), jnp.float32, -scale, scale)
        w_hh = jax.random.uniform(k2, (4 * H, H), jnp.float32, -scale, scale)
        b_ih = jax.random.uniform(k3, (4 * H,), jnp.float32, -scale, scale)
        b_hh = jax.random.uniform(k4, (4 * H,), jnp.float32, -scale, scale)
        w_ih_t = perm_gates(w_ih).T                       # (in_sz, 4H)
        w_hh_t = perm_gates(w_hh).T                       # (H, 4H)
        bias = perm_gates(b_ih + b_hh).reshape(1, 4 * H)  # combined bias
        return w_ih_t, w_hh_t, bias

    key, k1, k2, k3, k4 = jax.random.split(key, 5)
    w_ih1_t, w_hh1_t, b1 = lstm_layer(k1, input_size)
    w_ih2_t, w_hh2_t, b2 = lstm_layer(k2, hidden_size)

    fan_in = hidden_size * sequence_length
    scale = 1.0 / jnp.sqrt(fan_in)
    return {
        "w_ih1_t": w_ih1_t, "w_hh1_t": w_hh1_t, "b1": b1,
        "w2_stacked": jnp.concatenate([w_ih2_t, w_hh2_t], axis=0),  # (2H, 4H)
        "b2": b2,
        "fc_w_t": jax.random.uniform(k3, (fan_in, output_sequence),
                                     jnp.float32, -scale, scale),
        "fc_b": jax.random.uniform(k4, (1, output_sequence),
                                   jnp.float32, -scale, scale),
    }


@jax.jit
def lstm_model_forward(params, x_btf):
    """x_btf: (B, T, input_size) — batch_first, matching the PyTorch module."""
    B, T, I = x_btf.shape

    # Layout glue only: time-major, pad batch to a sublane multiple, flatten
    # to (T*Bp, I) rows so every per-timestep slice in the kernel is aligned.
    Bp = ((B + 7) // 8) * 8
    x_tm = jnp.transpose(x_btf, (1, 0, 2))                 # (T, B, I)
    x_tm = jnp.pad(x_tm, ((0, 0), (0, Bp - B), (0, 0)))    # (T, Bp, I)
    x_rows = x_tm.reshape(T * Bp, I)

    out_p = _fused_forward_call(
        x_rows,
        params["w_ih1_t"], params["w_hh1_t"], params["b1"],
        params["w2_stacked"], params["b2"],
        params["fc_w_t"], params["fc_b"])
    return out_p[:B]


# Pure-JAX f32 reference (no Pallas) for a sanity check.  Uses the same
# (i, f, o, g) gate-ordered params as the kernel.
def _reference_forward(params, x_btf):
    B = x_btf.shape[0]
    H = params["w_hh1_t"].shape[0]

    def run_layer(x_seq, w_x, w_h, b):
        h = jnp.zeros((B, H), jnp.float32)
        c = jnp.zeros((B, H), jnp.float32)
        outs = []
        for t in range(x_seq.shape[1]):
            g = x_seq[:, t, :] @ w_x + h @ w_h + b
            i_g = jax.nn.sigmoid(g[:, 0 * H:1 * H])
            f_g = jax.nn.sigmoid(g[:, 1 * H:2 * H])
            o_g = jax.nn.sigmoid(g[:, 2 * H:3 * H])
            g_g = jnp.tanh(g[:, 3 * H:4 * H])
            c = f_g * c + i_g * g_g
            h = o_g * jnp.tanh(c)
            outs.append(h)
        return jnp.stack(outs, axis=1)

    h1_seq = run_layer(x_btf, params["w_ih1_t"], params["w_hh1_t"], params["b1"])
    w2 = params["w2_stacked"]
    h2_seq = run_layer(h1_seq, w2[:H], w2[H:], params["b2"])
    flat = h2_seq.reshape(B, -1)
    return flat @ params["fc_w_t"] + params["fc_b"]


if __name__ == "__main__":
    batch = 2
    sequence_length = 8
    input_size = 4
    hidden_size = 32
    num_layers = 2
    output_sequence = 4

    key = jax.random.PRNGKey(0)
    key, pkey, xkey = jax.random.split(key, 3)
    params = init_params(pkey, input_size, hidden_size, num_layers,
                         sequence_length, output_sequence)
    x = jax.random.normal(xkey, (batch, sequence_length, input_size), jnp.float32)

    out = lstm_model_forward(params, x)
    out = jax.block_until_ready(out)

    ref = _reference_forward(params, x)
    assert out.shape == (batch, output_sequence)
    # Tolerance relaxed vs the pure-f32 version: the recurrent matmuls run in
    # bf16 (f32 accumulation) per the performance review.
    assert jnp.allclose(out, ref, atol=2e-2, rtol=2e-2), (
        f"max abs err {jnp.max(jnp.abs(out - ref))}")

    print("KERNEL_OK")
</pallas_src>

<mosaic_0001>
module attributes {stable_mosaic.version = 11 : i64} {
  func.func @_fused_lstm_fc_kernel(%arg0: i32, %arg1: memref<64x4xf32, #tpu.memory_space<vmem>>, %arg2: memref<4x128xf32, #tpu.memory_space<vmem>>, %arg3: memref<32x128xf32, #tpu.memory_space<vmem>>, %arg4: memref<1x128xf32, #tpu.memory_space<vmem>>, %arg5: memref<64x128xf32, #tpu.memory_space<vmem>>, %arg6: memref<1x128xf32, #tpu.memory_space<vmem>>, %arg7: memref<256x4xf32, #tpu.memory_space<vmem>>, %arg8: memref<1x4xf32, #tpu.memory_space<vmem>>, %arg9: memref<8x4xf32, #tpu.memory_space<vmem>>, %arg10: memref<64x128xf32, #tpu.memory_space<vmem>>, %arg11: memref<8x256xf32, #tpu.memory_space<vmem>>) attributes {dimension_semantics = [#tpu.dimension_semantics<arbitrary>], iteration_bounds = array<i64: 1>, scalar_prefetch = 0 : i64, scratch_operands = 2 : i64, tpu.core_type = #tpu.core_type<tc>, window_params = [{pipeline_mode = #tpu.pipeline_mode<synchronous>, transform_indices = @transform_0, window_bounds = array<i64: 64, 4>}, {pipeline_mode = #tpu.pipeline_mode<synchronous>, transform_indices = @transform_1, window_bounds = array<i64: 4, 128>}, {pipeline_mode = #tpu.pipeline_mode<synchronous>, transform_indices = @transform_2, window_bounds = array<i64: 32, 128>}, {pipeline_mode = #tpu.pipeline_mode<synchronous>, transform_indices = @transform_3, window_bounds = array<i64: 1, 128>}, {pipeline_mode = #tpu.pipeline_mode<synchronous>, transform_indices = @transform_4, window_bounds = array<i64: 64, 128>}, {pipeline_mode = #tpu.pipeline_mode<synchronous>, transform_indices = @transform_5, window_bounds = array<i64: 1, 128>}, {pipeline_mode = #tpu.pipeline_mode<synchronous>, transform_indices = @transform_6, window_bounds = array<i64: 256, 4>}, {pipeline_mode = #tpu.pipeline_mode<synchronous>, transform_indices = @transform_7, window_bounds = array<i64: 1, 4>}, {pipeline_mode = #tpu.pipeline_mode<synchronous>, transform_indices = @transform_8, window_bounds = array<i64: 8, 4>}]} {
    %c0 = arith.constant 0 : index
    %c0_0 = arith.constant 0 : index
    %0 = vector.load %arg1[%c0, %c0_0] : memref<64x4xf32, #tpu.memory_space<vmem>>, vector<64x4xf32>
    %c0_1 = arith.constant 0 : index
    %c0_2 = arith.constant 0 : index
    %1 = vector.load %arg2[%c0_1, %c0_2] : memref<4x128xf32, #tpu.memory_space<vmem>>, vector<4x128xf32>
    %cst = arith.constant dense<0.000000e+00> : vector<64x128xf32>
    %2 = tpu.matmul %0, %1, %cst {dimension_numbers = #tpu.dot_dimension_numbers<[1], [0], [0], [1], [0, 0, 1, 1], [], []>} : vector<64x4xf32>, vector<4x128xf32>, vector<64x128xf32> -> vector<64x128xf32>
    %c0_3 = arith.constant 0 : index
    %c0_4 = arith.constant 0 : index
    %3 = vector.load %arg4[%c0_3, %c0_4] : memref<1x128xf32, #tpu.memory_space<vmem>>, vector<1x128xf32>
    %4 = vector.broadcast %3 : vector<1x128xf32> to vector<64x128xf32>
    %5 = arith.addf %2, %4 : vector<64x128xf32>
    %c0_5 = arith.constant 0 : index
    %c0_6 = arith.constant 0 : index
    %6 = vector.load %arg10[%c0_5, %c0_6] : memref<64x128xf32, #tpu.memory_space<vmem>>, vector<64x128xf32>
    tpu.vector_store %arg10[%c0_5, %c0_6], %5 {strides = array<i32>} : memref<64x128xf32, #tpu.memory_space<vmem>>, vector<64x128xf32>,
    %c0_7 = arith.constant 0 : index
    %c0_8 = arith.constant 0 : index
    %7 = vector.load %arg3[%c0_7, %c0_8] : memref<32x128xf32, #tpu.memory_space<vmem>>, vector<32x128xf32>
    %8 = arith.truncf %7 : vector<32x128xf32> to vector<32x128xbf16>
    %c0_9 = arith.constant 0 : index
    %c0_10 = arith.constant 0 : index
    %9 = vector.load %arg5[%c0_9, %c0_10] : memref<64x128xf32, #tpu.memory_space<vmem>>, vector<64x128xf32>
    %10 = arith.truncf %9 : vector<64x128xf32> to vector<64x128xbf16>
    %c0_11 = arith.constant 0 : index
    %c0_12 = arith.constant 0 : index
    %11 = vector.load %arg6[%c0_11, %c0_12] : memref<1x128xf32, #tpu.memory_space<vmem>>, vector<1x128xf32>
    %cst_13 = arith.constant 0.000000e+00 : f32
    %12 = vector.broadcast %cst_13 : f32 to vector<8x32xf32>
    %cst_14 = arith.constant 0.000000e+00 : f32
    %13 = vector.broadcast %cst_14 : f32 to vector<8x32xf32>
    %cst_15 = arith.constant 0.000000e+00 : f32
    %14 = vector.broadcast %cst_15 : f32 to vector<8x32xf32>
    %cst_16 = arith.constant 0.000000e+00 : f32
    %15 = vector.broadcast %cst_16 : f32 to vector<8x32xf32>
    %c0_17 = arith.constant 0 : index
    %c0_18 = arith.constant 0 : index
    %16 = vector.load %arg10[%c0_17, %c0_18] : memref<64x128xf32, #tpu.memory_space<vmem>>, vector<8x128xf32>
    %17 = arith.truncf %12 : vector<8x32xf32> to vector<8x32xbf16>
    %cst_19 = arith.constant dense<0.000000e+00> : vector<8x128xf32>
    %18 = tpu.matmul %17, %8, %cst_19 {dimension_numbers = #tpu.dot_dimension_numbers<[1], [0], [0], [1], [0, 0, 1, 1], [], []>} : vector<8x32xbf16>, vector<32x128xbf16>, vector<8x128xf32> -> vector<8x128xf32>
    %19 = arith.addf %16, %18 : vector<8x128xf32>
    %20 = vector.extract_strided_slice %19 {offsets = [0, 0], sizes = [8, 96], strides = [1, 1]} : vector<8x128xf32> to vector<8x96xf32>
    %21 = arith.negf %20 : vector<8x96xf32>
    %22 = math.exp %21 : vector<8x96xf32>
    %cst_20 = arith.constant 1.000000e+00 : f32
    %23 = vector.broadcast %cst_20 : f32 to vector<8x96xf32>
    %24 = arith.addf %23, %22 : vector<8x96xf32>
    %25 = arith.divf %23, %24 : vector<8x96xf32>
    %26 = vector.extract_strided_slice %25 {offsets = [0, 0], sizes = [8, 32], strides = [1, 1]} : vector<8x96xf32> to vector<8x32xf32>
    %27 = vector.extract_strided_slice %25 {offsets = [0, 32], sizes = [8, 32], strides = [1, 1]} : vector<8x96xf32> to vector<8x32xf32>
    %28 = vector.extract_strided_slice %25 {offsets = [0, 64], sizes = [8, 32], strides = [1, 1]} : vector<8x96xf32> to vector<8x32xf32>
    %29 = vector.extract_strided_slice %19 {offsets = [0, 96], sizes = [8, 32], strides = [1, 1]} : vector<8x128xf32> to vector<8x32xf32>
    %30 = math.tanh %29 : vector<8x32xf32>
    %31 = arith.mulf %27, %13 : vector<8x32xf32>
    %32 = arith.mulf %26, %30 : vector<8x32xf32>
    %33 = arith.addf %31, %32 : vector<8x32xf32>
    %34 = math.tanh %33 : vector<8x32xf32>
    %35 = arith.mulf %28, %34 : vector<8x32xf32>
    %36 = tpu.concatenate %35, %14 in 1 : vector<8x32xf32>, vector<8x32xf32> -> vector<8x64xf32>
    %37 = arith.truncf %36 : vector<8x64xf32> to vector<8x64xbf16>
    %cst_21 = arith.constant dense<0.000000e+00> : vector<8x128xf32>
    %38 = tpu.matmul %37, %10, %cst_21 {dimension_numbers = #tpu.dot_dimension_numbers<[1], [0], [0], [1], [0, 0, 1, 1], [], []>} : vector<8x64xbf16>, vector<64x128xbf16>, vector<8x128xf32> -> vector<8x128xf32>
    %39 = vector.broadcast %11 : vector<1x128xf32> to vector<8x128xf32>
    %40 = arith.addf %38, %39 : vector<8x128xf32>
    %41 = vector.extract_strided_slice %40 {offsets = [0, 0], sizes = [8, 96], strides = [1, 1]} : vector<8x128xf32> to vector<8x96xf32>
    %42 = arith.negf %41 : vector<8x96xf32>
    %43 = math.exp %42 : vector<8x96xf32>
    %cst_22 = arith.constant 1.000000e+00 : f32
    %44 = vector.broadcast %cst_22 : f32 to vector<8x96xf32>
    %45 = arith.addf %44, %43 : vector<8x96xf32>
    %46 = arith.divf %44, %45 : vector<8x96xf32>
    %47 = vector.extract_strided_slice %46 {offsets = [0, 0], sizes = [8, 32], strides = [1, 1]} : vector<8x96xf32> to vector<8x32xf32>
    %48 = vector.extract_strided_slice %46 {offsets = [0, 32], sizes = [8, 32], strides = [1, 1]} : vector<8x96xf32> to vector<8x32xf32>
    %49 = vector.extract_strided_slice %46 {offsets = [0, 64], sizes = [8, 32], strides = [1, 1]} : vector<8x96xf32> to vector<8x32xf32>
    %50 = vector.extract_strided_slice %40 {offsets = [0, 96], sizes = [8, 32], strides = [1, 1]} : vector<8x128xf32> to vector<8x32xf32>
    %51 = math.tanh %50 : vector<8x32xf32>
    %52 = arith.mulf %48, %15 : vector<8x32xf32>
    %53 = arith.mulf %47, %51 : vector<8x32xf32>
    %54 = arith.addf %52, %53 : vector<8x32xf32>
    %55 = math.tanh %54 : vector<8x32xf32>
    %56 = arith.mulf %49, %55 : vector<8x32xf32>
    %c0_23 = arith.constant 0 : index
    %c0_24 = arith.constant 0 : index
    %57 = vector.load %arg11[%c0_23, %c0_24] : memref<8x256xf32, #tpu.memory_space<vmem>>, vector<8x32xf32>
    tpu.vector_store %arg11[%c0_23, %c0_24], %56 {strides = array<i32>} : memref<8x256xf32, #tpu.memory_space<vmem>>, vector<8x32xf32>,
    %c8 = arith.constant 8 : index
    %c0_25 = arith.constant 0 : index
    %58 = vector.load %arg10[%c8, %c0_25] : memref<64x128xf32, #tpu.memory_space<vmem>>, vector<8x128xf32>
    %59 = arith.truncf %35 : vector<8x32xf32> to vector<8x32xbf16>
    %cst_26 = arith.constant dense<0.000000e+00> : vector<8x128xf32>
    %60 = tpu.matmul %59, %8, %cst_26 {dimension_numbers = #tpu.dot_dimension_numbers<[1], [0], [0], [1], [0, 0, 1, 1], [], []>} : vector<8x32xbf16>, vector<32x128xbf16>, vector<8x128xf32> -> vector<8x128xf32>
    %61 = arith.addf %58, %60 : vector<8x128xf32>
    %62 = vector.extract_strided_slice %61 {offsets = [0, 0], sizes = [8, 96], strides = [1, 1]} : vector<8x128xf32> to vector<8x96xf32>
    %63 = arith.negf %62 : vector<8x96xf32>
    %64 = math.exp %63 : vector<8x96xf32>
    %cst_27 = arith.constant 1.000000e+00 : f32
    %65 = vector.broadcast %cst_27 : f32 to vector<8x96xf32>
    %66 = arith.addf %65, %64 : vector<8x96xf32>
    %67 = arith.divf %65, %66 : vector<8x96xf32>
    %68 = vector.extract_strided_slice %67 {offsets = [0, 0], sizes = [8, 32], strides = [1, 1]} : vector<8x96xf32> to vector<8x32xf32>
    %69 = vector.extract_strided_slice %67 {offsets = [0, 32], sizes = [8, 32], strides = [1, 1]} : vector<8x96xf32> to vector<8x32xf32>
    %70 = vector.extract_strided_slice %67 {offsets = [0, 64], sizes = [8, 32], strides = [1, 1]} : vector<8x96xf32> to vector<8x32xf32>
    %71 = vector.extract_strided_slice %61 {offsets = [0, 96], sizes = [8, 32], strides = [1, 1]} : vector<8x128xf32> to vector<8x32xf32>
    %72 = math.tanh %71 : vector<8x32xf32>
    %73 = arith.mulf %69, %33 : vector<8x32xf32>
    %74 = arith.mulf %68, %72 : vector<8x32xf32>
    %75 = arith.addf %73, %74 : vector<8x32xf32>
    %76 = math.tanh %75 : vector<8x32xf32>
    %77 = arith.mulf %70, %76 : vector<8x32xf32>
    %78 = tpu.concatenate %77, %56 in 1 : vector<8x32xf32>, vector<8x32xf32> -> vector<8x64xf32>
    %79 = arith.truncf %78 : vector<8x64xf32> to vector<8x64xbf16>
    %cst_28 = arith.constant dense<0.000000e+00> : vector<8x128xf32>
    %80 = tpu.matmul %79, %10, %cst_28 {dimension_numbers = #tpu.dot_dimension_numbers<[1], [0], [0], [1], [0, 0, 1, 1], [], []>} : vector<8x64xbf16>, vector<64x128xbf16>, vector<8x128xf32> -> vector<8x128xf32>
    %81 = vector.broadcast %11 : vector<1x128xf32> to vector<8x128xf32>
    %82 = arith.addf %80, %81 : vector<8x128xf32>
    %83 = vector.extract_strided_slice %82 {offsets = [0, 0], sizes = [8, 96], strides = [1, 1]} : vector<8x128xf32> to vector<8x96xf32>
    %84 = arith.negf %83 : vector<8x96xf32>
    %85 = math.exp %84 : vector<8x96xf32>
    %cst_29 = arith.constant 1.000000e+00 : f32
    %86 = vector.broadcast %cst_29 : f32 to vector<8x96xf32>
    %87 = arith.addf %86, %85 : vector<8x96xf32>
    %88 = arith.divf %86, %87 : vector<8x96xf32>
    %89 = vector.extract_strided_slice %88 {offsets = [0, 0], sizes = [8, 32], strides = [1, 1]} : vector<8x96xf32> to vector<8x32xf32>
    %90 = vector.extract_strided_slice %88 {offsets = [0, 32], sizes = [8, 32], strides = [1, 1]} : vector<8x96xf32> to vector<8x32xf32>
    %91 = vector.extract_strided_slice %88 {offsets = [0, 64], sizes = [8, 32], strides = [1, 1]} : vector<8x96xf32> to vector<8x32xf32>
    %92 = vector.extract_strided_slice %82 {offsets = [0, 96], sizes = [8, 32], strides = [1, 1]} : vector<8x128xf32> to vector<8x32xf32>
    %93 = math.tanh %92 : vector<8x32xf32>
    %94 = arith.mulf %90, %54 : vector<8x32xf32>
    %95 = arith.mulf %89, %93 : vector<8x32xf32>
    %96 = arith.addf %94, %95 : vector<8x32xf32>
    %97 = math.tanh %96 : vector<8x32xf32>
    %98 = arith.mulf %91, %97 : vector<8x32xf32>
    %c0_30 = arith.constant 0 : index
    %c32 = arith.constant 32 : index
    %99 = vector.load %arg11[%c0_30, %c32] : memref<8x256xf32, #tpu.memory_space<vmem>>, vector<8x32xf32>
    tpu.vector_store %arg11[%c0_30, %c32], %98 {strides = array<i32>} : memref<8x256xf32, #tpu.memory_space<vmem>>, vector<8x32xf32>,
    %c16 = arith.constant 16 : index
    %c0_31 = arith.constant 0 : index
    %100 = vector.load %arg10[%c16, %c0_31] : memref<64x128xf32, #tpu.memory_space<vmem>>, vector<8x128xf32>
    %101 = arith.truncf %77 : vector<8x32xf32> to vector<8x32xbf16>
    %cst_32 = arith.constant dense<0.000000e+00> : vector<8x128xf32>
    %102 = tpu.matmul %101, %8, %cst_32 {dimension_numbers = #tpu.dot_dimension_numbers<[1], [0], [0], [1], [0, 0, 1, 1], [], []>} : vector<8x32xbf16>, vector<32x128xbf16>, vector<8x128xf32> -> vector<8x128xf32>
    %103 = arith.addf %100, %102 : vector<8x128xf32>
    %104 = vector.extract_strided_slice %103 {offsets = [0, 0], sizes = [8, 96], strides = [1, 1]} : vector<8x128xf32> to vector<8x96xf32>
    %105 = arith.negf %104 : vector<8x96xf32>
    %106 = math.exp %105 : vector<8x96xf32>
    %cst_33 = arith.constant 1.000000e+00 : f32
    %107 = vector.broadcast %cst_33 : f32 to vector<8x96xf32>
    %108 = arith.addf %107, %106 : vector<8x96xf32>
    %109 = arith.divf %107, %108 : vector<8x96xf32>
    %110 = vector.extract_strided_slice %109 {offsets = [0, 0], sizes = [8, 32], strides = [1, 1]} : vector<8x96xf32> to vector<8x32xf32>
    %111 = vector.extract_strided_slice %109 {offsets = [0, 32], sizes = [8, 32], strides = [1, 1]} : vector<8x96xf32> to vector<8x32xf32>
    %112 = vector.extract_strided_slice %109 {offsets = [0, 64], sizes = [8, 32], strides = [1, 1]} : vector<8x96xf32> to vector<8x32xf32>
    %113 = vector.extract_strided_slice %103 {offsets = [0, 96], sizes = [8, 32], strides = [1, 1]} : vector<8x128xf32> to vector<8x32xf32>
    %114 = math.tanh %113 : vector<8x32xf32>
    %115 = arith.mulf %111, %75 : vector<8x32xf32>
    %116 = arith.mulf %110, %114 : vector<8x32xf32>
    %117 = arith.addf %115, %116 : vector<8x32xf32>
    %118 = math.tanh %117 : vector<8x32xf32>
    %119 = arith.mulf %112, %118 : vector<8x32xf32>
    %120 = tpu.concatenate %119, %98 in 1 : vector<8x32xf32>, vector<8x32xf32> -> vector<8x64xf32>
    %121 = arith.truncf %120 : vector<8x64xf32> to vector<8x64xbf16>
    %cst_34 = arith.constant dense<0.000000e+00> : vector<8x128xf32>
    %122 = tpu.matmul %121, %10, %cst_34 {dimension_numbers = #tpu.dot_dimension_numbers<[1], [0], [0], [1], [0, 0, 1, 1], [], []>} : vector<8x64xbf16>, vector<64x128xbf16>, vector<8x128xf32> -> vector<8x128xf32>
    %123 = vector.broadcast %11 : vector<1x128xf32> to vector<8x128xf32>
    %124 = arith.addf %122, %123 : vector<8x128xf32>
    %125 = vector.extract_strided_slice %124 {offsets = [0, 0], sizes = [8, 96], strides = [1, 1]} : vector<8x128xf32> to vector<8x96xf32>
    %126 = arith.negf %125 : vector<8x96xf32>
    %127 = math.exp %126 : vector<8x96xf32>
    %cst_35 = arith.constant 1.000000e+00 : f32
    %128 = vector.broadcast %cst_35 : f32 to vector<8x96xf32>
    %129 = arith.addf %128, %127 : vector<8x96xf32>
    %130 = arith.divf %128, %129 : vector<8x96xf32>
    %131 = vector.extract_strided_slice %130 {offsets = [0, 0], sizes = [8, 32], strides = [1, 1]} : vector<8x96xf32> to vector<8x32xf32>
    %132 = vector.extract_strided_slice %130 {offsets = [0, 32], sizes = [8, 32], strides = [1, 1]} : vector<8x96xf32> to vector<8x32xf32>
    %133 = vector.extract_strided_slice %130 {offsets = [0, 64], sizes = [8, 32], strides = [1, 1]} : vector<8x96xf32> to vector<8x32xf32>
    %134 = vector.extract_strided_slice %124 {offsets = [0, 96], sizes = [8, 32], strides = [1, 1]} : vector<8x128xf32> to vector<8x32xf32>
    %135 = math.tanh %134 : vector<8x32xf32>
    %136 = arith.mulf %132, %96 : vector<8x32xf32>
    %137 = arith.mulf %131, %135 : vector<8x32xf32>
    %138 = arith.addf %136, %137 : vector<8x32xf32>
    %139 = math.tanh %138 : vector<8x32xf32>
    %140 = arith.mulf %133, %139 : vector<8x32xf32>
    %c0_36 = arith.constant 0 : index
    %c64 = arith.constant 64 : index
    %141 = vector.load %arg11[%c0_36, %c64] : memref<8x256xf32, #tpu.memory_space<vmem>>, vector<8x32xf32>
    tpu.vector_store %arg11[%c0_36, %c64], %140 {strides = array<i32>} : memref<8x256xf32, #tpu.memory_space<vmem>>, vector<8x32xf32>,
    %c24 = arith.constant 24 : index
    %c0_37 = arith.constant 0 : index
    %142 = vector.load %arg10[%c24, %c0_37] : memref<64x128xf32, #tpu.memory_space<vmem>>, vector<8x128xf32>
    %143 = arith.truncf %119 : vector<8x32xf32> to vector<8x32xbf16>
    %cst_38 = arith.constant dense<0.000000e+00> : vector<8x128xf32>
    %144 = tpu.matmul %143, %8, %cst_38 {dimension_numbers = #tpu.dot_dimension_numbers<[1], [0], [0], [1], [0, 0, 1, 1], [], []>} : vector<8x32xbf16>, vector<32x128xbf16>, vector<8x128xf32> -> vector<8x128xf32>
    %145 = arith.addf %142, %144 : vector<8x128xf32>
    %146 = vector.extract_strided_slice %145 {offsets = [0, 0], sizes = [8, 96], strides = [1, 1]} : vector<8x128xf32> to vector<8x96xf32>
    %147 = arith.negf %146 : vector<8x96xf32>
    %148 = math.exp %147 : vector<8x96xf32>
    %cst_39 = arith.constant 1.000000e+00 : f32
    %149 = vector.broadcast %cst_39 : f32 to vector<8x96xf32>
    %150 = arith.addf %149, %148 : vector<8x96xf32>
    %151 = arith.divf %149, %150 : vector<8x96xf32>
    %152 = vector.extract_strided_slice %151 {offsets = [0, 0], sizes = [8, 32], strides = [1, 1]} : vector<8x96xf32> to vector<8x32xf32>
    %153 = vector.extract_strided_slice %151 {offsets = [0, 32], sizes = [8, 32], strides = [1, 1]} : vector<8x96xf32> to vector<8x32xf32>
    %154 = vector.extract_strided_slice %151 {offsets = [0, 64], sizes = [8, 32], strides = [1, 1]} : vector<8x96xf32> to vector<8x32xf32>
    %155 = vector.extract_strided_slice %145 {offsets = [0, 96], sizes = [8, 32], strides = [1, 1]} : vector<8x128xf32> to vector<8x32xf32>
    %156 = math.tanh %155 : vector<8x32xf32>
    %157 = arith.mulf %153, %117 : vector<8x32xf32>
    %158 = arith.mulf %152, %156 : vector<8x32xf32>
    %159 = arith.addf %157, %158 : vector<8x32xf32>
    %160 = math.tanh %159 : vector<8x32xf32>
    %161 = arith.mulf %154, %160 : vector<8x32xf32>
    %162 = tpu.concatenate %161, %140 in 1 : vector<8x32xf32>, vector<8x32xf32> -> vector<8x64xf32>
    %163 = arith.truncf %162 : vector<8x64xf32> to vector<8x64xbf16>
    %cst_40 = arith.constant dense<0.000000e+00> : vector<8x128xf32>
    %164 = tpu.matmul %163, %10, %cst_40 {dimension_numbers = #tpu.dot_dimension_numbers<[1], [0], [0], [1], [0, 0, 1, 1], [], []>} : vector<8x64xbf16>, vector<64x128xbf16>, vector<8x128xf32> -> vector<8x128xf32>
    %165 = vector.broadcast %11 : vector<1x128xf32> to vector<8x128xf32>
    %166 = arith.addf %164, %165 : vector<8x128xf32>
    %167 = vector.extract_strided_slice %166 {offsets = [0, 0], sizes = [8, 96], strides = [1, 1]} : vector<8x128xf32> to vector<8x96xf32>
    %168 = arith.negf %167 : vector<8x96xf32>
    %169 = math.exp %168 : vector<8x96xf32>
    %cst_41 = arith.constant 1.000000e+00 : f32
    %170 = vector.broadcast %cst_41 : f32 to vector<8x96xf32>
    %171 = arith.addf %170, %169 : vector<8x96xf32>
    %172 = arith.divf %170, %171 : vector<8x96xf32>
    %173 = vector.extract_strided_slice %172 {offsets = [0, 0], sizes = [8, 32], strides = [1, 1]} : vector<8x96xf32> to vector<8x32xf32>
    %174 = vector.extract_strided_slice %172 {offsets = [0, 32], sizes = [8, 32], strides = [1, 1]} : vector<8x96xf32> to vector<8x32xf32>
    %175 = vector.extract_strided_slice %172 {offsets = [0, 64], sizes = [8, 32], strides = [1, 1]} : vector<8x96xf32> to vector<8x32xf32>
    %176 = vector.extract_strided_slice %166 {offsets = [0, 96], sizes = [8, 32], strides = [1, 1]} : vector<8x128xf32> to vector<8x32xf32>
    %177 = math.tanh %176 : vector<8x32xf32>
    %178 = arith.mulf %174, %138 : vector<8x32xf32>
    %179 = arith.mulf %173, %177 : vector<8x32xf32>
    %180 = arith.addf %178, %179 : vector<8x32xf32>
    %181 = math.tanh %180 : vector<8x32xf32>
    %182 = arith.mulf %175, %181 : vector<8x32xf32>
    %c0_42 = arith.constant 0 : index
    %c96 = arith.constant 96 : index
    %183 = vector.load %arg11[%c0_42, %c96] : memref<8x256xf32, #tpu.memory_space<vmem>>, vector<8x32xf32>
    tpu.vector_store %arg11[%c0_42, %c96], %182 {strides = array<i32>} : memref<8x256xf32, #tpu.memory_space<vmem>>, vector<8x32xf32>,
    %c32_43 = arith.constant 32 : index
    %c0_44 = arith.constant 0 : index
    %184 = vector.load %arg10[%c32_43, %c0_44] : memref<64x128xf32, #tpu.memory_space<vmem>>, vector<8x128xf32>
    %185 = arith.truncf %161 : vector<8x32xf32> to vector<8x32xbf16>
    %cst_45 = arith.constant dense<0.000000e+00> : vector<8x128xf32>
    %186 = tpu.matmul %185, %8, %cst_45 {dimension_numbers = #tpu.dot_dimension_numbers<[1], [0], [0], [1], [0, 0, 1, 1], [], []>} : vector<8x32xbf16>, vector<32x128xbf16>, vector<8x128xf32> -> vector<8x128xf32>
    %187 = arith.addf %184, %186 : vector<8x128xf32>
    %188 = vector.extract_strided_slice %187 {offsets = [0, 0], sizes = [8, 96], strides = [1, 1]} : vector<8x128xf32> to vector<8x96xf32>
    %189 = arith.negf %188 : vector<8x96xf32>
    %190 = math.exp %189 : vector<8x96xf32>
    %cst_46 = arith.constant 1.000000e+00 : f32
    %191 = vector.broadcast %cst_46 : f32 to vector<8x96xf32>
    %192 = arith.addf %191, %190 : vector<8x96xf32>
    %193 = arith.divf %191, %192 : vector<8x96xf32>
    %194 = vector.extract_strided_slice %193 {offsets = [0, 0], sizes = [8, 32], strides = [1, 1]} : vector<8x96xf32> to vector<8x32xf32>
    %195 = vector.extract_strided_slice %193 {offsets = [0, 32], sizes = [8, 32], strides = [1, 1]} : vector<8x96xf32> to vector<8x32xf32>
    %196 = vector.extract_strided_slice %193 {offsets = [0, 64], sizes = [8, 32], strides = [1, 1]} : vector<8x96xf32> to vector<8x32xf32>
    %197 = vector.extract_strided_slice %187 {offsets = [0, 96], sizes = [8, 32], strides = [1, 1]} : vector<8x128xf32> to vector<8x32xf32>
    %198 = math.tanh %197 : vector<8x32xf32>
    %199 = arith.mulf %195, %159 : vector<8x32xf32>
    %200 = arith.mulf %194, %198 : vector<8x32xf32>
    %201 = arith.addf %199, %200 : vector<8x32xf32>
    %202 = math.tanh %201 : vector<8x32xf32>
    %203 = arith.mulf %196, %202 : vector<8x32xf32>
    %204 = tpu.concatenate %203, %182 in 1 : vector<8x32xf32>, vector<8x32xf32> -> vector<8x64xf32>
    %205 = arith.truncf %204 : vector<8x64xf32> to vector<8x64xbf16>
    %cst_47 = arith.constant dense<0.000000e+00> : vector<8x128xf32>
    %206 = tpu.matmul %205, %10, %cst_47 {dimension_numbers = #tpu.dot_dimension_numbers<[1], [0], [0], [1], [0, 0, 1, 1], [], []>} : vector<8x64xbf16>, vector<64x128xbf16>, vector<8x128xf32> -> vector<8x128xf32>
    %207 = vector.broadcast %11 : vector<1x128xf32> to vector<8x128xf32>
    %208 = arith.addf %206, %207 : vector<8x128xf32>
    %209 = vector.extract_strided_slice %208 {offsets = [0, 0], sizes = [8, 96], strides = [1, 1]} : vector<8x128xf32> to vector<8x96xf32>
    %210 = arith.negf %209 : vector<8x96xf32>
    %211 = math.exp %210 : vector<8x96xf32>
    %cst_48 = arith.constant 1.000000e+00 : f32
    %212 = vector.broadcast %cst_48 : f32 to vector<8x96xf32>
    %213 = arith.addf %212, %211 : vector<8x96xf32>
    %214 = arith.divf %212, %213 : vector<8x96xf32>
    %215 = vector.extract_strided_slice %214 {offsets = [0, 0], sizes = [8, 32], strides = [1, 1]} : vector<8x96xf32> to vector<8x32xf32>
    %216 = vector.extract_strided_slice %214 {offsets = [0, 32], sizes = [8, 32], strides = [1, 1]} : vector<8x96xf32> to vector<8x32xf32>
    %217 = vector.extract_strided_slice %214 {offsets = [0, 64], sizes = [8, 32], strides = [1, 1]} : vector<8x96xf32> to vector<8x32xf32>
    %218 = vector.extract_strided_slice %208 {offsets = [0, 96], sizes = [8, 32], strides = [1, 1]} : vector<8x128xf32> to vector<8x32xf32>
    %219 = math.tanh %218 : vector<8x32xf32>
    %220 = arith.mulf %216, %180 : vector<8x32xf32>
    %221 = arith.mulf %215, %219 : vector<8x32xf32>
    %222 = arith.addf %220, %221 : vector<8x32xf32>
    %223 = math.tanh %222 : vector<8x32xf32>
    %224 = arith.mulf %217, %223 : vector<8x32xf32>
    %c0_49 = arith.constant 0 : index
    %c128 = arith.constant 128 : index
    %225 = vector.load %arg11[%c0_49, %c128] : memref<8x256xf32, #tpu.memory_space<vmem>>, vector<8x32xf32>
    tpu.vector_store %arg11[%c0_49, %c128], %224 {strides = array<i32>} : memref<8x256xf32, #tpu.memory_space<vmem>>, vector<8x32xf32>,
    %c40 = arith.constant 40 : index
    %c0_50 = arith.constant 0 : index
    %226 = vector.load %arg10[%c40, %c0_50] : memref<64x128xf32, #tpu.memory_space<vmem>>, vector<8x128xf32>
    %227 = arith.truncf %203 : vector<8x32xf32> to vector<8x32xbf16>
    %cst_51 = arith.constant dense<0.000000e+00> : vector<8x128xf32>
    %228 = tpu.matmul %227, %8, %cst_51 {dimension_numbers = #tpu.dot_dimension_numbers<[1], [0], [0], [1], [0, 0, 1, 1], [], []>} : vector<8x32xbf16>, vector<32x128xbf16>, vector<8x128xf32> -> vector<8x128xf32>
    %229 = arith.addf %226, %228 : vector<8x128xf32>
    %230 = vector.extract_strided_slice %229 {offsets = [0, 0], sizes = [8, 96], strides = [1, 1]} : vector<8x128xf32> to vector<8x96xf32>
    %231 = arith.negf %230 : vector<8x96xf32>
    %232 = math.exp %231 : vector<8x96xf32>
    %cst_52 = arith.constant 1.000000e+00 : f32
    %233 = vector.broadcast %cst_52 : f32 to vector<8x96xf32>
    %234 = arith.addf %233, %232 : vector<8x96xf32>
    %235 = arith.divf %233, %234 : vector<8x96xf32>
    %236 = vector.extract_strided_slice %235 {offsets = [0, 0], sizes = [8, 32], strides = [1, 1]} : vector<8x96xf32> to vector<8x32xf32>
    %237 = vector.extract_strided_slice %235 {offsets = [0, 32], sizes = [8, 32], strides = [1, 1]} : vector<8x96xf32> to vector<8x32xf32>
    %238 = vector.extract_strided_slice %235 {offsets = [0, 64], sizes = [8, 32], strides = [1, 1]} : vector<8x96xf32> to vector<8x32xf32>
    %239 = vector.extract_strided_slice %229 {offsets = [0, 96], sizes = [8, 32], strides = [1, 1]} : vector<8x128xf32> to vector<8x32xf32>
    %240 = math.tanh %239 : vector<8x32xf32>
    %241 = arith.mulf %237, %201 : vector<8x32xf32>
    %242 = arith.mulf %236, %240 : vector<8x32xf32>
    %243 = arith.addf %241, %242 : vector<8x32xf32>
    %244 = math.tanh %243 : vector<8x32xf32>
    %245 = arith.mulf %238, %244 : vector<8x32xf32>
    %246 = tpu.concatenate %245, %224 in 1 : vector<8x32xf32>, vector<8x32xf32> -> vector<8x64xf32>
    %247 = arith.truncf %246 : vector<8x64xf32> to vector<8x64xbf16>
    %cst_53 = arith.constant dense<0.000000e+00> : vector<8x128xf32>
    %248 = tpu.matmul %247, %10, %cst_53 {dimension_numbers = #tpu.dot_dimension_numbers<[1], [0], [0], [1], [0, 0, 1, 1], [], []>} : vector<8x64xbf16>, vector<64x128xbf16>, vector<8x128xf32> -> vector<8x128xf32>
    %249 = vector.broadcast %11 : vector<1x128xf32> to vector<8x128xf32>
    %250 = arith.addf %248, %249 : vector<8x128xf32>
    %251 = vector.extract_strided_slice %250 {offsets = [0, 0], sizes = [8, 96], strides = [1, 1]} : vector<8x128xf32> to vector<8x96xf32>
    %252 = arith.negf %251 : vector<8x96xf32>
    %253 = math.exp %252 : vector<8x96xf32>
    %cst_54 = arith.constant 1.000000e+00 : f32
    %254 = vector.broadcast %cst_54 : f32 to vector<8x96xf32>
    %255 = arith.addf %254, %253 : vector<8x96xf32>
    %256 = arith.divf %254, %255 : vector<8x96xf32>
    %257 = vector.extract_strided_slice %256 {offsets = [0, 0], sizes = [8, 32], strides = [1, 1]} : vector<8x96xf32> to vector<8x32xf32>
    %258 = vector.extract_strided_slice %256 {offsets = [0, 32], sizes = [8, 32], strides = [1, 1]} : vector<8x96xf32> to vector<8x32xf32>
    %259 = vector.extract_strided_slice %256 {offsets = [0, 64], sizes = [8, 32], strides = [1, 1]} : vector<8x96xf32> to vector<8x32xf32>
    %260 = vector.extract_strided_slice %250 {offsets = [0, 96], sizes = [8, 32], strides = [1, 1]} : vector<8x128xf32> to vector<8x32xf32>
    %261 = math.tanh %260 : vector<8x32xf32>
    %262 = arith.mulf %258, %222 : vector<8x32xf32>
    %263 = arith.mulf %257, %261 : vector<8x32xf32>
    %264 = arith.addf %262, %263 : vector<8x32xf32>
    %265 = math.tanh %264 : vector<8x32xf32>
    %266 = arith.mulf %259, %265 : vector<8x32xf32>
    %c0_55 = arith.constant 0 : index
    %c160 = arith.constant 160 : index
    %267 = vector.load %arg11[%c0_55, %c160] : memref<8x256xf32, #tpu.memory_space<vmem>>, vector<8x32xf32>
    tpu.vector_store %arg11[%c0_55, %c160], %266 {strides = array<i32>} : memref<8x256xf32, #tpu.memory_space<vmem>>, vector<8x32xf32>,
    %c48 = arith.constant 48 : index
    %c0_56 = arith.constant 0 : index
    %268 = vector.load %arg10[%c48, %c0_56] : memref<64x128xf32, #tpu.memory_space<vmem>>, vector<8x128xf32>
    %269 = arith.truncf %245 : vector<8x32xf32> to vector<8x32xbf16>
    %cst_57 = arith.constant dense<0.000000e+00> : vector<8x128xf32>
    %270 = tpu.matmul %269, %8, %cst_57 {dimension_numbers = #tpu.dot_dimension_numbers<[1], [0], [0], [1], [0, 0, 1, 1], [], []>} : vector<8x32xbf16>, vector<32x128xbf16>, vector<8x128xf32> -> vector<8x128xf32>
    %271 = arith.addf %268, %270 : vector<8x128xf32>
    %272 = vector.extract_strided_slice %271 {offsets = [0, 0], sizes = [8, 96], strides = [1, 1]} : vector<8x128xf32> to vector<8x96xf32>
    %273 = arith.negf %272 : vector<8x96xf32>
    %274 = math.exp %273 : vector<8x96xf32>
    %cst_58 = arith.constant 1.000000e+00 : f32
    %275 = vector.broadcast %cst_58 : f32 to vector<8x96xf32>
    %276 = arith.addf %275, %274 : vector<8x96xf32>
    %277 = arith.divf %275, %276 : vector<8x96xf32>
    %278 = vector.extract_strided_slice %277 {offsets = [0, 0], sizes = [8, 32], strides = [1, 1]} : vector<8x96xf32> to vector<8x32xf32>
    %279 = vector.extract_strided_slice %277 {offsets = [0, 32], sizes = [8, 32], strides = [1, 1]} : vector<8x96xf32> to vector<8x32xf32>
    %280 = vector.extract_strided_slice %277 {offsets = [0, 64], sizes = [8, 32], strides = [1, 1]} : vector<8x96xf32> to vector<8x32xf32>
    %281 = vector.extract_strided_slice %271 {offsets = [0, 96], sizes = [8, 32], strides = [1, 1]} : vector<8x128xf32> to vector<8x32xf32>
    %282 = math.tanh %281 : vector<8x32xf32>
    %283 = arith.mulf %279, %243 : vector<8x32xf32>
    %284 = arith.mulf %278, %282 : vector<8x32xf32>
    %285 = arith.addf %283, %284 : vector<8x32xf32>
    %286 = math.tanh %285 : vector<8x32xf32>
    %287 = arith.mulf %280, %286 : vector<8x32xf32>
    %288 = tpu.concatenate %287, %266 in 1 : vector<8x32xf32>, vector<8x32xf32> -> vector<8x64xf32>
    %289 = arith.truncf %288 : vector<8x64xf32> to vector<8x64xbf16>
    %cst_59 = arith.constant dense<0.000000e+00> : vector<8x128xf32>
    %290 = tpu.matmul %289, %10, %cst_59 {dimension_numbers = #tpu.dot_dimension_numbers<[1], [0], [0], [1], [0, 0, 1, 1], [], []>} : vector<8x64xbf16>, vector<64x128xbf16>, vector<8x128xf32> -> vector<8x128xf32>
    %291 = vector.broadcast %11 : vector<1x128xf32> to vector<8x128xf32>
    %292 = arith.addf %290, %291 : vector<8x128xf32>
    %293 = vector.extract_strided_slice %292 {offsets = [0, 0], sizes = [8, 96], strides = [1, 1]} : vector<8x128xf32> to vector<8x96xf32>
    %294 = arith.negf %293 : vector<8x96xf32>
    %295 = math.exp %294 : vector<8x96xf32>
    %cst_60 = arith.constant 1.000000e+00 : f32
    %296 = vector.broadcast %cst_60 : f32 to vector<8x96xf32>
    %297 = arith.addf %296, %295 : vector<8x96xf32>
    %298 = arith.divf %296, %297 : vector<8x96xf32>
    %299 = vector.extract_strided_slice %298 {offsets = [0, 0], sizes = [8, 32], strides = [1, 1]} : vector<8x96xf32> to vector<8x32xf32>
    %300 = vector.extract_strided_slice %298 {offsets = [0, 32], sizes = [8, 32], strides = [1, 1]} : vector<8x96xf32> to vector<8x32xf32>
    %301 = vector.extract_strided_slice %298 {offsets = [0, 64], sizes = [8, 32], strides = [1, 1]} : vector<8x96xf32> to vector<8x32xf32>
    %302 = vector.extract_strided_slice %292 {offsets = [0, 96], sizes = [8, 32], strides = [1, 1]} : vector<8x128xf32> to vector<8x32xf32>
    %303 = math.tanh %302 : vector<8x32xf32>
    %304 = arith.mulf %300, %264 : vector<8x32xf32>
    %305 = arith.mulf %299, %303 : vector<8x32xf32>
    %306 = arith.addf %304, %305 : vector<8x32xf32>
    %307 = math.tanh %306 : vector<8x32xf32>
    %308 = arith.mulf %301, %307 : vector<8x32xf32>
    %c0_61 = arith.constant 0 : index
    %c192 = arith.constant 192 : index
    %309 = vector.load %arg11[%c0_61, %c192] : memref<8x256xf32, #tpu.memory_space<vmem>>, vector<8x32xf32>
    tpu.vector_store %arg11[%c0_61, %c192], %308 {strides = array<i32>} : memref<8x256xf32, #tpu.memory_space<vmem>>, vector<8x32xf32>,
    %c56 = arith.constant 56 : index
    %c0_62 = arith.constant 0 : index
    %310 = vector.load %arg10[%c56, %c0_62] : memref<64x128xf32, #tpu.memory_space<vmem>>, vector<8x128xf32>
    %311 = arith.truncf %287 : vector<8x32xf32> to vector<8x32xbf16>
    %cst_63 = arith.constant dense<0.000000e+00> : vector<8x128xf32>
    %312 = tpu.matmul %311, %8, %cst_63 {dimension_numbers = #tpu.dot_dimension_numbers<[1], [0], [0], [1], [0, 0, 1, 1], [], []>} : vector<8x32xbf16>, vector<32x128xbf16>, vector<8x128xf32> -> vector<8x128xf32>
    %313 = arith.addf %310, %312 : vector<8x128xf32>
    %314 = vector.extract_strided_slice %313 {offsets = [0, 0], sizes = [8, 96], strides = [1, 1]} : vector<8x128xf32> to vector<8x96xf32>
    %315 = arith.negf %314 : vector<8x96xf32>
    %316 = math.exp %315 : vector<8x96xf32>
    %cst_64 = arith.constant 1.000000e+00 : f32
    %317 = vector.broadcast %cst_64 : f32 to vector<8x96xf32>
    %318 = arith.addf %317, %316 : vector<8x96xf32>
    %319 = arith.divf %317, %318 : vector<8x96xf32>
    %320 = vector.extract_strided_slice %319 {offsets = [0, 0], sizes = [8, 32], strides = [1, 1]} : vector<8x96xf32> to vector<8x32xf32>
    %321 = vector.extract_strided_slice %319 {offsets = [0, 32], sizes = [8, 32], strides = [1, 1]} : vector<8x96xf32> to vector<8x32xf32>
    %322 = vector.extract_strided_slice %319 {offsets = [0, 64], sizes = [8, 32], strides = [1, 1]} : vector<8x96xf32> to vector<8x32xf32>
    %323 = vector.extract_strided_slice %313 {offsets = [0, 96], sizes = [8, 32], strides = [1, 1]} : vector<8x128xf32> to vector<8x32xf32>
    %324 = math.tanh %323 : vector<8x32xf32>
    %325 = arith.mulf %321, %285 : vector<8x32xf32>
    %326 = arith.mulf %320, %324 : vector<8x32xf32>
    %327 = arith.addf %325, %326 : vector<8x32xf32>
    %328 = math.tanh %327 : vector<8x32xf32>
    %329 = arith.mulf %322, %328 : vector<8x32xf32>
    %330 = tpu.concatenate %329, %308 in 1 : vector<8x32xf32>, vector<8x32xf32> -> vector<8x64xf32>
    %331 = arith.truncf %330 : vector<8x64xf32> to vector<8x64xbf16>
    %cst_65 = arith.constant dense<0.000000e+00> : vector<8x128xf32>
    %332 = tpu.matmul %331, %10, %cst_65 {dimension_numbers = #tpu.dot_dimension_numbers<[1], [0], [0], [1], [0, 0, 1, 1], [], []>} : vector<8x64xbf16>, vector<64x128xbf16>, vector<8x128xf32> -> vector<8x128xf32>
    %333 = vector.broadcast %11 : vector<1x128xf32> to vector<8x128xf32>
    %334 = arith.addf %332, %333 : vector<8x128xf32>
    %335 = vector.extract_strided_slice %334 {offsets = [0, 0], sizes = [8, 96], strides = [1, 1]} : vector<8x128xf32> to vector<8x96xf32>
    %336 = arith.negf %335 : vector<8x96xf32>
    %337 = math.exp %336 : vector<8x96xf32>
    %cst_66 = arith.constant 1.000000e+00 : f32
    %338 = vector.broadcast %cst_66 : f32 to vector<8x96xf32>
    %339 = arith.addf %338, %337 : vector<8x96xf32>
    %340 = arith.divf %338, %339 : vector<8x96xf32>
    %341 = vector.extract_strided_slice %340 {offsets = [0, 0], sizes = [8, 32], strides = [1, 1]} : vector<8x96xf32> to vector<8x32xf32>
    %342 = vector.extract_strided_slice %340 {offsets = [0, 32], sizes = [8, 32], strides = [1, 1]} : vector<8x96xf32> to vector<8x32xf32>
    %343 = vector.extract_strided_slice %340 {offsets = [0, 64], sizes = [8, 32], strides = [1, 1]} : vector<8x96xf32> to vector<8x32xf32>
    %344 = vector.extract_strided_slice %334 {offsets = [0, 96], sizes = [8, 32], strides = [1, 1]} : vector<8x128xf32> to vector<8x32xf32>
    %345 = math.tanh %344 : vector<8x32xf32>
    %346 = arith.mulf %342, %306 : vector<8x32xf32>
    %347 = arith.mulf %341, %345 : vector<8x32xf32>
    %348 = arith.addf %346, %347 : vector<8x32xf32>
    %349 = math.tanh %348 : vector<8x32xf32>
    %350 = arith.mulf %343, %349 : vector<8x32xf32>
    %c0_67 = arith.constant 0 : index
    %c224 = arith.constant 224 : index
    %351 = vector.load %arg11[%c0_67, %c224] : memref<8x256xf32, #tpu.memory_space<vmem>>, vector<8x32xf32>
    tpu.vector_store %arg11[%c0_67, %c224], %350 {strides = array<i32>} : memref<8x256xf32, #tpu.memory_space<vmem>>, vector<8x32xf32>,
    %c0_68 = arith.constant 0 : index
    %c0_69 = arith.constant 0 : index
    %352 = vector.load %arg11[%c0_68, %c0_69] : memref<8x256xf32, #tpu.memory_space<vmem>>, vector<8x256xf32>
    %c0_70 = arith.constant 0 : index
    %c0_71 = arith.constant 0 : index
    %353 = vector.load %arg7[%c0_70, %c0_71] : memref<256x4xf32, #tpu.memory_space<vmem>>, vector<256x4xf32>
    %cst_72 = arith.constant dense<0.000000e+00> : vector<8x4xf32>
    %354 = tpu.matmul %352, %353, %cst_72 {dimension_numbers = #tpu.dot_dimension_numbers<[1], [0], [0], [1], [0, 0, 1, 1], [], []>} : vector<8x256xf32>, vector<256x4xf32>, vector<8x4xf32> -> vector<8x4xf32>
    %c0_73 = arith.constant 0 : index
    %c0_74 = arith.constant 0 : index
    %355 = vector.load %arg8[%c0_73, %c0_74] : memref<1x4xf32, #tpu.memory_space<vmem>>, vector<1x4xf32>
    %356 = vector.broadcast %355 : vector<1x4xf32> to vector<8x4xf32>
    %357 = arith.addf %354, %356 : vector<8x4xf32>
    %c0_75 = arith.constant 0 : index
    %c0_76 = arith.constant 0 : index
    %358 = vector.load %arg9[%c0_75, %c0_76] : memref<8x4xf32, #tpu.memory_space<vmem>>, vector<8x4xf32>
    tpu.vector_store %arg9[%c0_75, %c0_76], %357 {strides = array<i32>} : memref<8x4xf32, #tpu.memory_space<vmem>>, vector<8x4xf32>,
    return
  }
  func.func @transform_0(%arg0: i32) -> (i32, i32) {
    %c0_i32 = arith.constant 0 : i32
    %c0_i32_0 = arith.constant 0 : i32
    %c0_i32_1 = arith.constant 0 : i32
    return %c0_i32, %c0_i32_0 : i32, i32
  }
  func.func @transform_1(%arg0: i32) -> (i32, i32) {
    %c0_i32 = arith.constant 0 : i32
    %c0_i32_0 = arith.constant 0 : i32
    %c0_i32_1 = arith.constant 0 : i32
    return %c0_i32, %c0_i32_0 : i32, i32
  }
  func.func @transform_2(%arg0: i32) -> (i32, i32) {
    %c0_i32 = arith.constant 0 : i32
    %c0_i32_0 = arith.constant 0 : i32
    %c0_i32_1 = arith.constant 0 : i32
    return %c0_i32, %c0_i32_0 : i32, i32
  }
  func.func @transform_3(%arg0: i32) -> (i32, i32) {
    %c0_i32 = arith.constant 0 : i32
    %c0_i32_0 = arith.constant 0 : i32
    %c0_i32_1 = arith.constant 0 : i32
    return %c0_i32, %c0_i32_0 : i32, i32
  }
  func.func @transform_4(%arg0: i32) -> (i32, i32) {
    %c0_i32 = arith.constant 0 : i32
    %c0_i32_0 = arith.constant 0 : i32
    %c0_i32_1 = arith.constant 0 : i32
    return %c0_i32, %c0_i32_0 : i32, i32
  }
  func.func @transform_5(%arg0: i32) -> (i32, i32) {
    %c0_i32 = arith.constant 0 : i32
    %c0_i32_0 = arith.constant 0 : i32
    %c0_i32_1 = arith.constant 0 : i32
    return %c0_i32, %c0_i32_0 : i32, i32
  }
  func.func @transform_6(%arg0: i32) -> (i32, i32) {
    %c0_i32 = arith.constant 0 : i32
    %c0_i32_0 = arith.constant 0 : i32
    %c0_i32_1 = arith.constant 0 : i32
    return %c0_i32, %c0_i32_0 : i32, i32
  }
  func.func @transform_7(%arg0: i32) -> (i32, i32) {
    %c0_i32 = arith.constant 0 : i32
    %c0_i32_0 = arith.constant 0 : i32
    %c0_i32_1 = arith.constant 0 : i32
    return %c0_i32, %c0_i32_0 : i32, i32
  }
  func.func @transform_8(%arg0: i32) -> (i32, i32) {
    %c0_i32 = arith.constant 0 : i32
    %c0_i32_0 = arith.constant 0 : i32
    %c0_i32_1 = arith.constant 0 : i32
    return %c0_i32, %c0_i32_0 : i32, i32
  }
}

</mosaic_0001>

<bundles_post_ra>
// kernel: lstm_model_forward.1
= control target key start
LH: loop header
LB: loop body
LE: loop exit
PB: predicated region body
PF: predicated region fallthrough
CT: control target
= control target key end

     0   :  { %vm71_vm0 = vcmask 1043456   ;;  %vm46_vm1 = vcmask 31744   ;;  %v2007_v1 = vmov 0.0   ;;  %vm2008_vm2 = vmmov 0   ;;  %s2010_s19 = smov 32   ;;  %s2607_s1 = inlined_call_operand.vmem [shape: f32[4,128], index: 1, kind: input, shape index: {}]   ;;  %s2608_s0 = inlined_call_operand.vmem [shape: f32[64,4], index: 0, kind: input, shape index: {}]   ;;  %s2609_s2 = inlined_call_operand.vmem [shape: f32[32,128], index: 2, kind: input, shape index: {}]   ;;  %s2610_s3 = inlined_call_operand.vmem [shape: f32[1,128], index: 3, kind: input, shape index: {}]   ;;  %s2611_s4 = inlined_call_operand.vmem [shape: f32[64,128], index: 4, kind: input, shape index: {}]   ;;  %s2612_s5 = inlined_call_operand.vmem [shape: f32[1,128], index: 5, kind: input, shape index: {}]   ;;  %s2613_s6 = inlined_call_operand.vmem [shape: f32[256,4], index: 6, kind: input, shape index: {}]   ;;  %s2614_s7 = inlined_call_operand.vmem [shape: f32[1,4], index: 7, kind: input, shape index: {}]   ;;  %s2615_s8 = inlined_call_operand.vmem [shape: f32[8,4], index: 8, kind: output, shape index: {}]  }
   0x1   :  { %v38_v0 = vld [vmem:[%s2607_s1] sm:$0xf]  ;;  %1712 = vmatprep.subr.bf16.mxu1 %v2007_v1  ;;  %v190_v3 = vld [vmem:[%s2609_s2 + $0x10] sm:$0xff]  ;;  %1716 = vmatprep.mubr.msk.bf16.mxu1 %vm2008_vm2, %v2007_v1  ;;  %v191_v4 = vld [vmem:[%s2609_s2 + $0x18] sm:$0xff]  ;;  %v2009_v10 = vmov 0   ;;  %vm208_vm3 = vcmask 261120  }
   0x2   :  { %v30_v2 = vld [vmem:[%s2608_s0] sm:$0xff]  ;;  %1698 = vmatprep.subr.msk.mxu0 %vm71_vm0, %v38_v0  ;;  %v31_v5 = vld [vmem:[%s2608_s0 + $0x8] sm:$0xff]  ;;  %v2082_v7 = vpack.c.bf16 %v191_v4, %v190_v3  ;;  %v32_v30 = vld [vmem:[%s2608_s0 + $0x10] sm:$0xff]  ;;  %vm289_vm4 = vcmask 523264   ;;  %vm515_vm5 = vcmask 523520   ;;  %vm663_vm6 = vcmask 785920  }
   0x3   :  { %1700 = vmatprep.mubr.msk.f32.mxu0 %vm46_vm1, %v30_v2  ;;  %v188_v6 = vld [vmem:[%s2609_s2] sm:$0xff]  ;;  %1699 = vmatpush3.msk.msra.mxu0 %vm71_vm0, %v38_v0  ;;  %v189_v8 = vld [vmem:[%s2609_s2 + $0x8] sm:$0xff]  ;;  %v33_v31 = vld [vmem:[%s2608_s0 + $0x18] sm:$0xff]  ;;  %vm819_vm7 = vcmask 1048320  }
   0x4   :  { %1701 = vmatmul.mubr.msk.f32.vlgmr.msra.gmra.mxu0 %vm46_vm1, %v31_v5  ;;  %1720 = vmatprep.subr.bf16.mxu0 %v2007_v1  ;;  %v2090_v9 = vpack.c.bf16 %v189_v8, %v188_v6  ;;  %v2106_v12 = vld [vmem:[%s2610_s3] ss:$0 sm:$0xff]  ;;  %v200_v33 = vld [vmem:[%s2611_s4 + $0x30] sm:$0xff]  ;;  %v201_v34 = vld [vmem:[%s2611_s4 + $0x38] sm:$0xff] }
   0x5   :  { %1713 = vmatpush3.bf16.msra.mxu1 %v2082_v7  ;;  %v34_v32 = vld [vmem:[%s2608_s0 + $0x20] sm:$0xff]  ;;  %1703 = vmatprep.mubr.msk.f32.mxu0 %vm46_vm1, %v32_v30  ;;  %v2133_v36 = vpack.c.bf16 %v201_v34, %v200_v33  ;;  %v199_v37 = vld [vmem:[%s2611_s4 + $0x28] sm:$0xff]  ;;  %v36_v40 = vld [vmem:[%s2608_s0 + $0x30] sm:$0xff] }
   0x6   :  { %1714 = vmatprep.subr.bf16.mxu1 %v2007_v1  ;;  %v198_v35 = vld [vmem:[%s2611_s4 + $0x20] sm:$0xff]  ;;  %v35_v38 = vld [vmem:[%s2608_s0 + $0x28] sm:$0xff]  ;;  %v196_v41 = vld [vmem:[%s2611_s4 + $0x10] sm:$0xff] }
   0x7   :  { %1721 = vmatpush3.bf16.msra.mxu0 %v2133_v36  ;;  %v2144_v39 = vpack.c.bf16 %v199_v37, %v198_v35  ;;  %v197_v42 = vld [vmem:[%s2611_s4 + $0x18] sm:$0xff]  ;;  %v194_v46 = vld [vmem:[%s2611_s4] sm:$0xff]  ;;  %v195_v47 = vld [vmem:[%s2611_s4 + $0x8] sm:$0xff] }
   0x8   :  { %1704 = vmatmul.mubr.msk.f32.gmra.mxu0 %vm46_vm1, %v33_v31  ;;  %1722 = vmatprep.subr.bf16.mxu0 %v2007_v1  ;;  %v37_v43 = vld [vmem:[%s2608_s0 + $0x38] sm:$0xff]  ;;  %v2162_v45 = vpack.c.bf16 %v197_v42, %v196_v41  ;;  %v2176_v48 = vpack.c.bf16 %v195_v47, %v194_v46  ;;  %s2011_s0 = smov 64   ;;  %v2223_v63 = vld [vmem:[%s2612_s5] ss:$0 sm:$0xff]  ;;  %s2012_s5 = smov 96  }
   0x9   :  { %1715 = vmatpush3.bf16.msra.mxu1 %v2090_v9  ;;  %1706 = vmatprep.mubr.msk.f32.mxu0 %vm46_vm1, %v34_v32 }
   0xa   :  { %1732 = vmatprep.subr.bf16.mxu1 %v2007_v1 }
   0xb   :  { %1723 = vmatpush3.bf16.msra.mxu0 %v2144_v39 }
   0xc   :  { %1717 = vmatmul.mubr.bf16.vlgmr.msra.gmra.mxu1 %v2009_v10  ;;  %1707 = vmatmul.mubr.msk.f32.gmra.mxu0 %vm46_vm1, %v35_v38 }
   0xd   :  { %1733 = vmatpush3.bf16.msra.mxu1 %v2082_v7  ;;  %1736 = vmatprep.mubr.msk.bf16.mxu1 %vm2008_vm2, %v2007_v1 }
   0xe   :  { %1734 = vmatprep.subr.bf16.mxu1 %v2007_v1  ;;  %1709 = vmatprep.mubr.msk.f32.mxu0 %vm46_vm1, %v36_v40 }
   0xf   :  { %1724 = vmatprep.subr.bf16.mxu0 %v2007_v1 }
  0x10   :  { %1710 = vmatmul.mubr.msk.f32.gmra.mxu0 %vm46_vm1, %v37_v43 }
  0x11   :  { %1735 = vmatpush3.bf16.msra.mxu1 %v2090_v9  ;;  %1728 = vmatprep.mubr.msk.bf16.mxu0 %vm2008_vm2, %v2007_v1 }
  0x12   :  { %1740 = vmatprep.subr.bf16.mxu1 %v2007_v1  ;;  %1725 = vmatpush3.bf16.msra.mxu0 %v2162_v45 }
  0x13   :  { %1726 = vmatprep.subr.bf16.mxu0 %v2007_v1 }
  0x16   :  { %1727 = vmatpush3.bf16.msra.mxu0 %v2176_v48 }
  0x17   :  { %1760 = vmatprep.subr.bf16.mxu0 %v2007_v1 }
  0xc4   :  { %v2101_v11 = vpop.f32.mrf.mxu0 }
  0xc5   :  { %v147_v61 = vadd.f32 %v2101_v11, %v2106_v12 }
  0xc6   :  { %v141_v13 = vpop.f32.mrf.mxu0 }
  0xc7   :  { %v142_v14 = vadd.f32 %v2106_v12, %v141_v13 }
  0xc8   :  { %v2206_v56 = vpop.f32.mrf.mxu0 }
  0xca   :  { %v2208_v57 = vpop.f32.mrf.mxu0 }
  0xcc   :  { %v246_v15 = vpop.f32.mrf.mxu1  ;;  %v2210_v58 = vpop.f32.mrf.mxu0 }
  0xcd   :  { %v252_v16 = vadd.f32 %v246_v15, %v142_v14 }
  0xce   :  { %v1718_v17 = vpop.f32.mrf.mxu1  ;;  %v2212_v59 = vpop.f32.mrf.mxu0 }
  0xcf   :  { %1878 = vtanh.f32 %v252_v16  ;;  %v1557_v21 = vmul.f32 -1.442695, %v252_v16 }
  0xd0   :  { %v249_v18 = vpop.f32.mrf.mxu1  ;;  %v2214_v60 = vpop.f32.mrf.mxu0 }
  0xd1   :  { %1880 = vpow2.f32 %v1557_v21 }
  0xd2   :  { %v1719_v19 = vpop.f32.mrf.mxu1  ;;  %v2218_v62 = vpop.f32.mrf.mxu0 }
  0xdc   :  { %v1879_v20 = vpop.eup %1878 }
  0xdd   :  { %262 = vrot.lane.b32.xlu0 %v1879_v20, %s2010_s19 }
  0xde   :  { %v1881_v22 = vpop.eup %1880 }
  0xdf   :  { %v256_v23 = vadd.f32 1.0, %v1881_v22 }
  0xe1   :  { %1882 = vrcp.f32 %v256_v23 }
  0xee   :  { %v1883_v24 = vpop.eup %1882 }
  0xef   :  { %v260_v27 = vmul.f32 0.0, %v1883_v24 }
 0x14f   :  { %v263_v25 = vpop.permute.xlu0 %262 }
 0x150   :  { %v265_v26 = vmul.f32 %v1883_v24, %v263_v25 }
 0x152   :  { %267 = vrot.lane.b32.xlu0 %v265_v26, %s2010_s19 }
 0x1c4   :  { %v268_v28 = vpop.permute.xlu0 %267 }
 0x1c5   :  { %v2111_v29 = vadd.f32 %v268_v28, %v260_v27 }
 0x1c7   :  { %1884 = vtanh.f32 %v2111_v29 }
 0x1d4   :  { %v1885_v44 = vpop.eup %1884 }
 0x1d5   :  { %273 = vrot.lane.b32.xlu1 %v1885_v44, %s2010_s19 }
 0x247   :  { %v274_v49 = vpop.permute.xlu1 %273 }
 0x248   :  { %v276_v50 = vmul.f32 %v1883_v24, %v274_v49 }
 0x24a   :  { %v363_v51 = vpack.c.bf16 %v276_v50, %v276_v50  ;;  %278 = vrot.lane.b32.xlu1 %v276_v50, %s2011_s0 }
 0x24c   :  { %365 = vrot.lane.b32.xlu0 %v363_v51, %s2011_s0 }
 0x2bc   :  { %v279_v52 = vpop.permute.xlu1 %278 }
 0x2bd   :  { %v281_v53 = vsel %vm208_vm3, %v279_v52, 0.0 }
 0x2be   :  { %v282_v54 = vpack.c.bf16 %v281_v53, %v281_v53  ;;  %v366_v55 = vpop.permute.xlu0 %365 }
 0x2bf   :  { %1737 = vmatmul.mubr.msk.bf16.vlgmr.msra.gmra.mxu1 %vm208_vm3, %v366_v55  ;;  %v152_v55 = vadd.f32 %v2106_v12, %v2208_v57 }
 0x2c0   :  { %1729 = vmatmul.mubr.msk.bf16.vlgmr.msra.gmra.mxu0 %vm289_vm4, %v282_v54  ;;  %1741 = vmatpush3.bf16.msra.mxu1 %v2133_v36 }
 0x2c1   :  { %1742 = vmatprep.subr.bf16.mxu1 %v2007_v1  ;;  %1748 = vmatprep.mubr.msk.bf16.mxu1 %vm2008_vm2, %v2007_v1 }
 0x2c2   :  { %1761 = vmatpush3.bf16.msra.mxu0 %v2133_v36  ;;  %1768 = vmatprep.mubr.msk.bf16.mxu0 %vm2008_vm2, %v2007_v1 }
 0x2c3   :  { %1762 = vmatprep.subr.bf16.mxu0 %v2007_v1 }
 0x2c4   :  { %1743 = vmatpush3.bf16.msra.mxu1 %v2144_v39 }
 0x2c5   :  { %1744 = vmatprep.subr.bf16.mxu1 %v2007_v1 }
 0x2c6   :  { %1763 = vmatpush3.bf16.msra.mxu0 %v2144_v39 }
 0x2c7   :  { %1764 = vmatprep.subr.bf16.mxu0 %v2007_v1 }
 0x2c8   :  { %1745 = vmatpush3.bf16.msra.mxu1 %v2162_v45 }
 0x2c9   :  { %1746 = vmatprep.subr.bf16.mxu1 %v2007_v1 }
 0x2ca   :  { %1765 = vmatpush3.bf16.msra.mxu0 %v2162_v45 }
 0x2cb   :  { %1766 = vmatprep.subr.bf16.mxu0 %v2007_v1 }
 0x2cc   :  { %1747 = vmatpush3.bf16.msra.mxu1 %v2176_v48 }
 0x2cd   :  { %1752 = vmatprep.subr.bf16.mxu1 %v2007_v1 }
 0x2ce   :  { %1767 = vmatpush3.bf16.msra.mxu0 %v2176_v48 }
 0x2cf   :  { %1792 = vmatprep.subr.bf16.mxu0 %v2007_v1 }
 0x37f   :  { %v404_v0 = vpop.f32.mrf.mxu1 }
 0x380   :  { %v410_v2 = vadd.f32 %v404_v0, %v147_v61  ;;  %v327_v3 = vpop.f32.mrf.mxu0 }
 0x381   :  { %v328_v4 = vadd.f32 %v2223_v63, %v327_v3  ;;  %v1738_v5 = vpop.f32.mrf.mxu1 }
 0x382   :  { %1886 = vtanh.f32 %v410_v2  ;;  %v1730_v6 = vpop.f32.mrf.mxu0  ;;  %v1562_v16 = vmul.f32 -1.442695, %v410_v2 }
 0x383   :  { %1888 = vtanh.f32 %v328_v4  ;;  %v407_v8 = vpop.f32.mrf.mxu1  ;;  %v1560_v17 = vmul.f32 -1.442695, %v328_v4 }
 0x384   :  { %v330_v10 = vpop.f32.mrf.mxu0  ;;  %1890 = vpow2.f32 %v1562_v16 }
 0x385   :  { %v1739_v13 = vpop.f32.mrf.mxu1  ;;  %1892 = vpow2.f32 %v1560_v17 }
 0x386   :  { %v1731_v11 = vpop.f32.mrf.mxu0 }
 0x38f   :  { %v1887_v14 = vpop.eup %1886 }
 0x390   :  { %v1889_v15 = vpop.eup %1888  ;;  %420 = vrot.lane.b32.xlu0 %v1887_v14, %s2010_s19 }
 0x391   :  { %342 = vrot.lane.b32.xlu1 %v1889_v15, %s2010_s19  ;;  %v1891_v18 = vpop.eup %1890 }
 0x392   :  { %v1893_v19 = vpop.eup %1892  ;;  %v414_v20 = vadd.f32 1.0, %v1891_v18 }
 0x393   :  { %v336_v21 = vadd.f32 1.0, %v1893_v19 }
 0x394   :  { %1894 = vrcp.f32 %v414_v20 }
 0x395   :  { %1896 = vrcp.f32 %v336_v21 }
 0x3a1   :  { %v1895_v22 = vpop.eup %1894 }
 0x3a2   :  { %v1897_v24 = vpop.eup %1896  ;;  %v418_v28 = vmul.f32 %v1895_v22, %v2111_v29 }
 0x3a3   :  { %v340_v31 = vmul.f32 0.0, %v1897_v24 }
 0x402   :  { %v421_v23 = vpop.permute.xlu0 %420 }
 0x403   :  { %v423_v25 = vmul.f32 %v1895_v22, %v421_v23  ;;  %v343_v26 = vpop.permute.xlu1 %342 }
 0x404   :  { %v345_v27 = vmul.f32 %v1897_v24, %v343_v26 }
 0x405   :  { %425 = vrot.lane.b32.xlu0 %v423_v25, %s2010_s19 }
 0x406   :  { %347 = vrot.lane.b32.xlu1 %v345_v27, %s2010_s19 }
 0x477   :  { %v426_v30 = vpop.permute.xlu0 %425 }
 0x478   :  { %v2231_v32 = vadd.f32 %v426_v30, %v418_v28  ;;  %v348_v33 = vpop.permute.xlu1 %347 }
 0x479   :  { %v2233_v34 = vadd.f32 %v348_v33, %v340_v31 }
 0x47a   :  { %1898 = vtanh.f32 %v2231_v32 }
 0x47b   :  { %1900 = vtanh.f32 %v2233_v34 }
 0x487   :  { %v1899_v35 = vpop.eup %1898 }
 0x488   :  { %v1901_v37 = vpop.eup %1900  ;;  %431 = vrot.lane.b32.xlu0 %v1899_v35, %s2010_s19 }
 0x489   :  { %353 = vrot.lane.b32.xlu1 %v1901_v37, %s2010_s19 }
 0x4fa   :  { %v432_v38 = vpop.permute.xlu0 %431 }
 0x4fb   :  { %v434_v40 = vmul.f32 %v1895_v22, %v432_v38  ;;  %v354_v29 = vpop.permute.xlu1 %353 }
 0x4fc   :  { %v2239_v41 = vmul.f32 %v1897_v24, %v354_v29 }
 0x4fd   :  { %436 = vrot.lane.b32.xlu1 %v434_v40, %s2011_s0  ;;  %v518_v42 = vpack.c.bf16 %v434_v40, %v434_v40 }
 0x4fe   :  { %439 = vrot.lane.b32.xlu0 %v2239_v41, %s2012_s5 }
 0x501   :  { %520 = vrot.lane.b32.xlu1 %v518_v42, %s2011_s0  ;;  %v157_v42 = vadd.f32 %v2206_v56, %v2106_v12 }
 0x56f   :  { %v437_v43 = vpop.permute.xlu1 %436 }
 0x570   :  { %v440_v44 = vpop.permute.xlu0 %439 }
 0x571   :  { %v442_v46 = vsel %vm208_vm3, %v437_v43, %v440_v44 }
 0x572   :  { %v443_v47 = vpack.c.bf16 %v442_v46, %v442_v46 }
 0x573   :  { %v521_v49 = vpop.permute.xlu1 %520 }
 0x574   :  { %1749 = vmatmul.mubr.msk.bf16.vlgmr.msra.gmra.mxu1 %vm289_vm4, %v443_v47 }
 0x575   :  { %1753 = vmatpush3.bf16.msra.mxu1 %v2082_v7  ;;  %1756 = vmatprep.mubr.msk.bf16.mxu1 %vm2008_vm2, %v2007_v1 }
 0x576   :  { %1754 = vmatprep.subr.bf16.mxu1 %v2007_v1 }
 0x579   :  { %1755 = vmatpush3.bf16.msra.mxu1 %v2090_v9 }
 0x57a   :  { %1772 = vmatprep.subr.bf16.mxu1 %v2007_v1 }
 0x57c   :  { %1757 = vmatmul.mubr.msk.bf16.vlgmr.msra.gmra.mxu1 %vm208_vm3, %v521_v49 }
 0x57d   :  { %1773 = vmatpush3.bf16.msra.mxu1 %v2082_v7  ;;  %1776 = vmatprep.mubr.msk.bf16.mxu1 %vm2008_vm2, %v2007_v1 }
 0x57e   :  { %1774 = vmatprep.subr.bf16.mxu1 %v2007_v1 }
 0x581   :  { %1775 = vmatpush3.bf16.msra.mxu1 %v2090_v9 }
 0x582   :  { %1780 = vmatprep.subr.bf16.mxu1 %v2007_v1 }
 0x634   :  { %v481_v50 = vpop.f32.mrf.mxu1 }
 0x635   :  { %v482_v51 = vadd.f32 %v2223_v63, %v481_v50 }
 0x636   :  { %v1750_v52 = vpop.f32.mrf.mxu1 }
 0x637   :  { %1902 = vtanh.f32 %v482_v51  ;;  %v1564_v8 = vmul.f32 -1.442695, %v482_v51 }
 0x638   :  { %v484_v53 = vpop.f32.mrf.mxu1 }
 0x63a   :  { %v1751_v54 = vpop.f32.mrf.mxu1 }
 0x63c   :  { %v559_v61 = vpop.f32.mrf.mxu1 }
 0x63d   :  { %v565_v0 = vadd.f32 %v559_v61, %v152_v55 }
 0x63e   :  { %v1758_v2 = vpop.f32.mrf.mxu1 }
 0x63f   :  { %1904 = vtanh.f32 %v565_v0  ;;  %v1566_v10 = vmul.f32 -1.442695, %v565_v0 }
 0x640   :  { %v562_v3 = vpop.f32.mrf.mxu1  ;;  %1906 = vpow2.f32 %v1564_v8 }
 0x641   :  { %1908 = vpow2.f32 %v1566_v10 }
 0x642   :  { %v1759_v4 = vpop.f32.mrf.mxu1 }
 0x644   :  { %v1903_v5 = vpop.eup %1902 }
 0x645   :  { %496 = vrot.lane.b32.xlu0 %v1903_v5, %s2010_s19 }
 0x64c   :  { %v1905_v6 = vpop.eup %1904 }
 0x64d   :  { %575 = vrot.lane.b32.xlu1 %v1905_v6, %s2010_s19  ;;  %v1907_v13 = vpop.eup %1906 }
 0x64e   :  { %v490_v11 = vadd.f32 1.0, %v1907_v13  ;;  %v1909_v57 = vpop.eup %1908 }
 0x64f   :  { %v569_v14 = vadd.f32 1.0, %v1909_v57 }
 0x650   :  { %1910 = vrcp.f32 %v490_v11 }
 0x651   :  { %1912 = vrcp.f32 %v569_v14 }
 0x65d   :  { %v1911_v15 = vpop.eup %1910 }
 0x65e   :  { %v1913_v18 = vpop.eup %1912  ;;  %v494_v21 = vmul.f32 %v1911_v15, %v2233_v34 }
 0x65f   :  { %v573_v24 = vmul.f32 %v1913_v18, %v2231_v32 }
 0x6b7   :  { %v497_v16 = vpop.permute.xlu0 %496 }
 0x6b8   :  { %v499_v17 = vmul.f32 %v1911_v15, %v497_v16 }
 0x6ba   :  { %501 = vrot.lane.b32.xlu0 %v499_v17, %s2010_s19 }
 0x6bf   :  { %v576_v19 = vpop.permute.xlu1 %575 }
 0x6c0   :  { %v578_v20 = vmul.f32 %v1913_v18, %v576_v19 }
 0x6c2   :  { %580 = vrot.lane.b32.xlu1 %v578_v20, %s2010_s19 }
 0x72c   :  { %v502_v22 = vpop.permute.xlu0 %501 }
 0x72d   :  { %v2268_v23 = vadd.f32 %v502_v22, %v494_v21 }
 0x72f   :  { %1914 = vtanh.f32 %v2268_v23 }
 0x734   :  { %v581_v25 = vpop.permute.xlu1 %580 }
 0x735   :  { %v2272_v26 = vadd.f32 %v581_v25, %v573_v24 }
 0x737   :  { %1916 = vtanh.f32 %v2272_v26 }
 0x73c   :  { %v1915_v27 = vpop.eup %1914 }
 0x73d   :  { %507 = vrot.lane.b32.xlu0 %v1915_v27, %s2010_s19 }
 0x744   :  { %v1917_v28 = vpop.eup %1916 }
 0x745   :  { %586 = vrot.lane.b32.xlu1 %v1917_v28, %s2010_s19 }
 0x7af   :  { %v508_v30 = vpop.permute.xlu0 %507 }
 0x7b0   :  { %v510_v31 = vmul.f32 %v1911_v15, %v508_v30 }
 0x7b2   :  { %512 = vrot.lane.b32.xlu0 %v510_v31, %s2012_s5 }
 0x7b7   :  { %v587_v33 = vpop.permute.xlu1 %586 }
 0x7b8   :  { %v589_v34 = vmul.f32 %v1913_v18, %v587_v33 }
 0x7ba   :  { %v666_v35 = vpack.c.bf16 %v589_v34, %v589_v34  ;;  %591 = vrot.lane.b32.xlu1 %v589_v34, %s2011_s0  ;;  %v162_v34 = vadd.f32 %v2106_v12, %v2212_v59 }
 0x7bc   :  { %668 = vrot.lane.b32.xlu0 %v666_v35, %s2011_s0 }
 0x824   :  { %v2280_v32 = vpop.permute.xlu0 %512 }
 0x82c   :  { %v592_v37 = vpop.permute.xlu1 %591 }
 0x82d   :  { %v594_v38 = vsel %vm208_vm3, %v592_v37, %v2280_v32 }
 0x82e   :  { %v595_v40 = vpack.c.bf16 %v594_v38, %v594_v38  ;;  %v669_v29 = vpop.permute.xlu0 %668 }
 0x82f   :  { %1777 = vmatmul.mubr.msk.bf16.vlgmr.msra.gmra.mxu1 %vm208_vm3, %v669_v29 }
 0x830   :  { %1769 = vmatmul.mubr.msk.bf16.vlgmr.msra.gmra.mxu0 %vm289_vm4, %v595_v40  ;;  %1781 = vmatpush3.bf16.msra.mxu1 %v2133_v36 }
 0x831   :  { %1782 = vmatprep.subr.bf16.mxu1 %v2007_v1  ;;  %1793 = vmatpush3.bf16.msra.mxu0 %v2082_v7 }
 0x832   :  { %1794 = vmatprep.subr.bf16.mxu0 %v2007_v1  ;;  %1788 = vmatprep.mubr.msk.bf16.mxu1 %vm2008_vm2, %v2007_v1 }
 0x833   :  { %1796 = vmatprep.mubr.msk.bf16.mxu0 %vm2008_vm2, %v2007_v1 }
 0x834   :  { %1783 = vmatpush3.bf16.msra.mxu1 %v2144_v39 }
 0x835   :  { %1784 = vmatprep.subr.bf16.mxu1 %v2007_v1  ;;  %1795 = vmatpush3.bf16.msra.mxu0 %v2090_v9 }
 0x836   :  { %1800 = vmatprep.subr.bf16.mxu0 %v2007_v1 }
 0x838   :  { %1785 = vmatpush3.bf16.msra.mxu1 %v2162_v45 }
 0x839   :  { %1786 = vmatprep.subr.bf16.mxu1 %v2007_v1 }
 0x83c   :  { %1787 = vmatpush3.bf16.msra.mxu1 %v2176_v48 }
 0x83d   :  { %1812 = vmatprep.subr.bf16.mxu1 %v2007_v1 }
 0x8ef   :  { %v707_v43 = vpop.f32.mrf.mxu1 }
 0x8f0   :  { %v713_v44 = vadd.f32 %v707_v43, %v157_v42  ;;  %v633_v46 = vpop.f32.mrf.mxu0 }
 0x8f1   :  { %v634_v47 = vadd.f32 %v2223_v63, %v633_v46  ;;  %v1778_v49 = vpop.f32.mrf.mxu1 }
 0x8f2   :  { %1918 = vtanh.f32 %v713_v44  ;;  %v1770_v50 = vpop.f32.mrf.mxu0  ;;  %v1570_v56 = vmul.f32 -1.442695, %v713_v44 }
 0x8f3   :  { %1920 = vtanh.f32 %v634_v47  ;;  %v710_v51 = vpop.f32.mrf.mxu1  ;;  %v1568_v0 = vmul.f32 -1.442695, %v634_v47 }
 0x8f4   :  { %v636_v52 = vpop.f32.mrf.mxu0  ;;  %1922 = vpow2.f32 %v1570_v56 }
 0x8f5   :  { %v1779_v53 = vpop.f32.mrf.mxu1  ;;  %1924 = vpow2.f32 %v1568_v0 }
 0x8f6   :  { %v1771_v54 = vpop.f32.mrf.mxu0 }
 0x8ff   :  { %v1919_v55 = vpop.eup %1918 }
 0x900   :  { %v1921_v61 = vpop.eup %1920  ;;  %723 = vrot.lane.b32.xlu0 %v1919_v55, %s2010_s19 }
 0x901   :  { %648 = vrot.lane.b32.xlu1 %v1921_v61, %s2010_s19  ;;  %v1923_v2 = vpop.eup %1922 }
 0x902   :  { %v1925_v3 = vpop.eup %1924  ;;  %v717_v4 = vadd.f32 1.0, %v1923_v2 }
 0x903   :  { %v642_v5 = vadd.f32 1.0, %v1925_v3 }
 0x904   :  { %1926 = vrcp.f32 %v717_v4 }
 0x905   :  { %1928 = vrcp.f32 %v642_v5 }
 0x911   :  { %v1927_v6 = vpop.eup %1926 }
 0x912   :  { %v1929_v10 = vpop.eup %1928  ;;  %v721_v14 = vmul.f32 %v1927_v6, %v2272_v26 }
 0x913   :  { %v646_v16 = vmul.f32 %v1929_v10, %v2268_v23 }
 0x972   :  { %v724_v8 = vpop.permute.xlu0 %723 }
 0x973   :  { %v726_v13 = vmul.f32 %v1927_v6, %v724_v8  ;;  %v649_v11 = vpop.permute.xlu1 %648 }
 0x974   :  { %v651_v57 = vmul.f32 %v1929_v10, %v649_v11 }
 0x975   :  { %728 = vrot.lane.b32.xlu0 %v726_v13, %s2010_s19 }
 0x976   :  { %653 = vrot.lane.b32.xlu1 %v651_v57, %s2010_s19 }
 0x9e7   :  { %v729_v15 = vpop.permute.xlu0 %728 }
 0x9e8   :  { %v2311_v17 = vadd.f32 %v729_v15, %v721_v14  ;;  %v654_v18 = vpop.permute.xlu1 %653 }
 0x9e9   :  { %v2313_v19 = vadd.f32 %v654_v18, %v646_v16 }
 0x9ea   :  { %1930 = vtanh.f32 %v2311_v17 }
 0x9eb   :  { %1932 = vtanh.f32 %v2313_v19 }
 0x9f7   :  { %v1931_v20 = vpop.eup %1930 }
 0x9f8   :  { %v1933_v21 = vpop.eup %1932  ;;  %734 = vrot.lane.b32.xlu0 %v1931_v20, %s2010_s19 }
 0x9f9   :  { %659 = vrot.lane.b32.xlu1 %v1933_v21, %s2010_s19 }
 0xa6a   :  { %v735_v22 = vpop.permute.xlu0 %734 }
 0xa6b   :  { %v737_v24 = vmul.f32 %v1927_v6, %v735_v22  ;;  %v660_v25 = vpop.permute.xlu1 %659 }
 0xa6c   :  { %v2319_v26 = vmul.f32 %v1929_v10, %v660_v25 }
 0xa6d   :  { %739 = vrot.lane.b32.xlu1 %v737_v24, %s2011_s0  ;;  %v822_v23 = vpack.c.bf16 %v737_v24, %v737_v24 }
 0xa6e   :  { %743 = vrot.lane.b32.xlu0 %v2319_v26, %s2012_s5 }
 0xa71   :  { %824 = vrot.lane.b32.xlu1 %v822_v23, %s2011_s0  ;;  %v167_v23 = vadd.f32 %v2210_v58, %v2106_v12 }
 0xadf   :  { %v740_v27 = vpop.permute.xlu1 %739 }
 0xae0   :  { %v744_v28 = vpop.permute.xlu0 %743 }
 0xae1   :  { %v746_v30 = vsel %vm208_vm3, %v740_v27, %v744_v28 }
 0xae2   :  { %v747_v31 = vpack.c.bf16 %v746_v30, %v746_v30 }
 0xae3   :  { %v825_v33 = vpop.permute.xlu1 %824 }
 0xae4   :  { %1789 = vmatmul.mubr.msk.bf16.vlgmr.msra.gmra.mxu1 %vm289_vm4, %v747_v31  ;;  %1797 = vmatmul.mubr.msk.bf16.vlgmr.msra.gmra.mxu0 %vm208_vm3, %v825_v33 }
 0xae5   :  { %1801 = vmatpush3.bf16.msra.mxu0 %v2133_v36  ;;  %1813 = vmatpush3.bf16.msra.mxu1 %v2082_v7 }
 0xae6   :  { %1802 = vmatprep.subr.bf16.mxu0 %v2007_v1  ;;  %1814 = vmatprep.subr.bf16.mxu1 %v2007_v1 }
 0xae7   :  { %1808 = vmatprep.mubr.msk.bf16.mxu0 %vm2008_vm2, %v2007_v1  ;;  %1816 = vmatprep.mubr.msk.bf16.mxu1 %vm2008_vm2, %v2007_v1 }
 0xae9   :  { %1803 = vmatpush3.bf16.msra.mxu0 %v2144_v39  ;;  %1815 = vmatpush3.bf16.msra.mxu1 %v2090_v9 }
 0xaea   :  { %1804 = vmatprep.subr.bf16.mxu0 %v2007_v1  ;;  %1820 = vmatprep.subr.bf16.mxu1 %v2007_v1 }
 0xaed   :  { %1805 = vmatpush3.bf16.msra.mxu0 %v2162_v45 }
 0xaee   :  { %1806 = vmatprep.subr.bf16.mxu0 %v2007_v1 }
 0xaf1   :  { %1807 = vmatpush3.bf16.msra.mxu0 %v2176_v48 }
 0xaf2   :  { %1832 = vmatprep.subr.bf16.mxu0 %v2007_v1 }
 0xba4   :  { %v785_v35 = vpop.f32.mrf.mxu1  ;;  %v863_v37 = vpop.f32.mrf.mxu0 }
 0xba5   :  { %v786_v38 = vadd.f32 %v2223_v63, %v785_v35  ;;  %v869_v40 = vadd.f32 %v863_v37, %v162_v34 }
 0xba6   :  { %v1790_v29 = vpop.f32.mrf.mxu1  ;;  %v1798_v42 = vpop.f32.mrf.mxu0 }
 0xba7   :  { %1934 = vtanh.f32 %v786_v38  ;;  %v1572_v59 = vmul.f32 -1.442695, %v786_v38  ;;  %v1574_v51 = vmul.f32 -1.442695, %v869_v40 }
 0xba8   :  { %1936 = vtanh.f32 %v869_v40  ;;  %v788_v43 = vpop.f32.mrf.mxu1  ;;  %v866_v44 = vpop.f32.mrf.mxu0 }
 0xba9   :  { %1938 = vpow2.f32 %v1572_v59 }
 0xbaa   :  { %v1791_v46 = vpop.f32.mrf.mxu1  ;;  %v1799_v47 = vpop.f32.mrf.mxu0  ;;  %1940 = vpow2.f32 %v1574_v51 }
 0xbb4   :  { %v1935_v49 = vpop.eup %1934 }
 0xbb5   :  { %v1937_v50 = vpop.eup %1936  ;;  %800 = vrot.lane.b32.xlu0 %v1935_v49, %s2010_s19 }
 0xbb6   :  { %879 = vrot.lane.b32.xlu1 %v1937_v50, %s2010_s19  ;;  %v1939_v52 = vpop.eup %1938 }
 0xbb7   :  { %v1941_v53 = vpop.eup %1940  ;;  %v794_v54 = vadd.f32 1.0, %v1939_v52 }
 0xbb8   :  { %v873_v55 = vadd.f32 1.0, %v1941_v53 }
 0xbb9   :  { %1942 = vrcp.f32 %v794_v54 }
 0xbba   :  { %1944 = vrcp.f32 %v873_v55 }
 0xbc6   :  { %v1943_v61 = vpop.eup %1942 }
 0xbc7   :  { %v1945_v0 = vpop.eup %1944  ;;  %v798_v5 = vmul.f32 %v1943_v61, %v2313_v19 }
 0xbc8   :  { %v877_v6 = vmul.f32 %v1945_v0, %v2311_v17 }
 0xc27   :  { %v801_v56 = vpop.permute.xlu0 %800 }
 0xc28   :  { %v880_v2 = vpop.permute.xlu1 %879  ;;  %v803_v3 = vmul.f32 %v1943_v61, %v801_v56 }
 0xc29   :  { %v882_v4 = vmul.f32 %v1945_v0, %v880_v2 }
 0xc2a   :  { %805 = vrot.lane.b32.xlu0 %v803_v3, %s2010_s19 }
 0xc2b   :  { %884 = vrot.lane.b32.xlu1 %v882_v4, %s2010_s19 }
 0xc9c   :  { %v806_v8 = vpop.permute.xlu0 %805 }
 0xc9d   :  { %v885_v10 = vpop.permute.xlu1 %884  ;;  %v2353_v13 = vadd.f32 %v806_v8, %v798_v5 }
 0xc9e   :  { %v2355_v11 = vadd.f32 %v885_v10, %v877_v6 }
 0xc9f   :  { %1946 = vtanh.f32 %v2353_v13 }
 0xca0   :  { %1948 = vtanh.f32 %v2355_v11 }
 0xcac   :  { %v1947_v57 = vpop.eup %1946 }
 0xcad   :  { %v1949_v14 = vpop.eup %1948  ;;  %811 = vrot.lane.b32.xlu0 %v1947_v57, %s2010_s19 }
 0xcae   :  { %890 = vrot.lane.b32.xlu1 %v1949_v14, %s2010_s19 }
 0xd1f   :  { %v812_v15 = vpop.permute.xlu0 %811 }
 0xd20   :  { %v891_v16 = vpop.permute.xlu1 %890  ;;  %v2361_v18 = vmul.f32 %v1943_v61, %v812_v15 }
 0xd21   :  { %v893_v17 = vmul.f32 %v1945_v0, %v891_v16 }
 0xd22   :  { %898 = vrot.lane.b32.xlu1 %v2361_v18, %s2012_s5 }
 0xd23   :  { %895 = vrot.lane.b32.xlu0 %v893_v17, %s2011_s0  ;;  %v976_v19 = vpack.c.bf16 %v893_v17, %v893_v17 }
 0xd27   :  { %978 = vrot.lane.b32.xlu0 %v976_v19, %s2011_s0 }
 0xd94   :  { %v899_v20 = vpop.permute.xlu1 %898 }
 0xd95   :  { %v896_v21 = vpop.permute.xlu0 %895 }
 0xd96   :  { %v901_v22 = vsel %vm208_vm3, %v896_v21, %v899_v20 }
 0xd97   :  { %v902_v24 = vpack.c.bf16 %v901_v22, %v901_v22 }
 0xd99   :  { %1809 = vmatmul.mubr.msk.bf16.vlgmr.msra.gmra.mxu0 %vm289_vm4, %v902_v24  ;;  %v979_v25 = vpop.permute.xlu0 %978 }
 0xd9a   :  { %1817 = vmatmul.mubr.msk.bf16.vlgmr.msra.gmra.mxu1 %vm208_vm3, %v979_v25  ;;  %1833 = vmatpush3.bf16.msra.mxu0 %v2082_v7 }
 0xd9b   :  { %1821 = vmatpush3.bf16.msra.mxu1 %v2133_v36  ;;  %1834 = vmatprep.subr.bf16.mxu0 %v2007_v1 }
 0xd9c   :  { %1822 = vmatprep.subr.bf16.mxu1 %v2007_v1  ;;  %1828 = vmatprep.mubr.msk.bf16.mxu1 %vm2008_vm2, %v2007_v1 }
 0xd9d   :  { %1836 = vmatprep.mubr.msk.bf16.mxu0 %vm2008_vm2, %v2007_v1 }
 0xd9e   :  { %1835 = vmatpush3.bf16.msra.mxu0 %v2090_v9 }
 0xd9f   :  { %1823 = vmatpush3.bf16.msra.mxu1 %v2144_v39  ;;  %1840 = vmatprep.subr.bf16.mxu0 %v2007_v1 }
 0xda0   :  { %1824 = vmatprep.subr.bf16.mxu1 %v2007_v1 }
 0xda3   :  { %1825 = vmatpush3.bf16.msra.mxu1 %v2162_v45 }
 0xda4   :  { %1826 = vmatprep.subr.bf16.mxu1 %v2007_v1 }
 0xda7   :  { %1827 = vmatpush3.bf16.msra.mxu1 %v2176_v48 }
 0xda8   :  { %1852 = vmatprep.subr.bf16.mxu1 %v2007_v1 }
 0xe59   :  { %v940_v27 = vpop.f32.mrf.mxu0 }
 0xe5a   :  { %v941_v28 = vadd.f32 %v2223_v63, %v940_v27  ;;  %v1017_v30 = vpop.f32.mrf.mxu1 }
 0xe5b   :  { %v1023_v31 = vadd.f32 %v1017_v30, %v167_v23  ;;  %v1810_v33 = vpop.f32.mrf.mxu0 }
 0xe5c   :  { %1950 = vtanh.f32 %v941_v28  ;;  %v1818_v34 = vpop.f32.mrf.mxu1  ;;  %v1576_v58 = vmul.f32 -1.442695, %v941_v28 }
 0xe5d   :  { %1952 = vtanh.f32 %v1023_v31  ;;  %v943_v35 = vpop.f32.mrf.mxu0  ;;  %v1578_v43 = vmul.f32 -1.442695, %v1023_v31 }
 0xe5e   :  { %v1020_v37 = vpop.f32.mrf.mxu1  ;;  %1954 = vpow2.f32 %v1576_v58 }
 0xe5f   :  { %v1811_v38 = vpop.f32.mrf.mxu0  ;;  %1956 = vpow2.f32 %v1578_v43 }
 0xe60   :  { %v1819_v40 = vpop.f32.mrf.mxu1 }
 0xe69   :  { %v1951_v29 = vpop.eup %1950 }
 0xe6a   :  { %v1953_v42 = vpop.eup %1952  ;;  %955 = vrot.lane.b32.xlu1 %v1951_v29, %s2010_s19 }
 0xe6b   :  { %1033 = vrot.lane.b32.xlu0 %v1953_v42, %s2010_s19  ;;  %v1955_v44 = vpop.eup %1954 }
 0xe6c   :  { %v1957_v46 = vpop.eup %1956  ;;  %v949_v47 = vadd.f32 1.0, %v1955_v44 }
 0xe6d   :  { %v1027_v49 = vadd.f32 1.0, %v1957_v46 }
 0xe6e   :  { %1958 = vrcp.f32 %v949_v47 }
 0xe6f   :  { %1960 = vrcp.f32 %v1027_v49 }
 0xe7b   :  { %v1959_v50 = vpop.eup %1958 }
 0xe7c   :  { %v1961_v51 = vpop.eup %1960  ;;  %v953_v55 = vmul.f32 %v1959_v50, %v2353_v13 }
 0xe7d   :  { %v1031_v56 = vmul.f32 %v1961_v51, %v2355_v11 }
 0xedc   :  { %v956_v59 = vpop.permute.xlu1 %955 }
 0xedd   :  { %v958_v52 = vmul.f32 %v1959_v50, %v956_v59  ;;  %v1034_v53 = vpop.permute.xlu0 %1033 }
 0xede   :  { %v1036_v54 = vmul.f32 %v1961_v51, %v1034_v53 }
 0xedf   :  { %960 = vrot.lane.b32.xlu1 %v958_v52, %s2010_s19 }
 0xee0   :  { %1038 = vrot.lane.b32.xlu0 %v1036_v54, %s2010_s19 }
 0xf51   :  { %v961_v61 = vpop.permute.xlu1 %960 }
 0xf52   :  { %v2395_v0 = vadd.f32 %v961_v61, %v953_v55  ;;  %v1039_v2 = vpop.permute.xlu0 %1038 }
 0xf53   :  { %v2397_v3 = vadd.f32 %v1039_v2, %v1031_v56 }
 0xf54   :  { %1962 = vtanh.f32 %v2395_v0 }
 0xf55   :  { %1964 = vtanh.f32 %v2397_v3 }
 0xf61   :  { %v1963_v4 = vpop.eup %1962 }
 0xf62   :  { %v1965_v5 = vpop.eup %1964  ;;  %966 = vrot.lane.b32.xlu1 %v1963_v4, %s2010_s19 }
 0xf63   :  { %1044 = vrot.lane.b32.xlu0 %v1965_v5, %s2010_s19 }
 0xfd4   :  { %v967_v6 = vpop.permute.xlu1 %966 }
 0xfd5   :  { %v2403_v8 = vmul.f32 %v1959_v50, %v967_v6  ;;  %v1045_v10 = vpop.permute.xlu0 %1044  ;;  %v2006_v6 = vld [vmem:[%s2610_s3] ss:$0 sm:$0xff] }
 0xfd6   :  { %v1047_v13 = vmul.f32 %v1961_v51, %v1045_v10 }
 0xfd7   :  { %1052 = vrot.lane.b32.xlu0 %v2403_v8, %s2012_s5 }
 0xfd8   :  { %1049 = vrot.lane.b32.xlu1 %v1047_v13, %s2011_s0  ;;  %v1130_v11 = vpack.c.bf16 %v1047_v13, %v1047_v13 }
 0xfdc   :  { %1132 = vrot.lane.b32.xlu1 %v1130_v11, %s2011_s0 }
0x1049   :  { %v1053_v57 = vpop.permute.xlu0 %1052 }
0x104a   :  { %v1050_v14 = vpop.permute.xlu1 %1049 }
0x104b   :  { %v1055_v15 = vsel %vm208_vm3, %v1050_v14, %v1053_v57 }
0x104c   :  { %v1056_v16 = vpack.c.bf16 %v1055_v15, %v1055_v15 }
0x104e   :  { %v1133_v17 = vpop.permute.xlu1 %1132  ;;  %1829 = vmatmul.mubr.msk.bf16.vlgmr.msra.gmra.mxu1 %vm289_vm4, %v1056_v16 }
0x104f   :  { %1837 = vmatmul.mubr.msk.bf16.vlgmr.msra.gmra.mxu0 %vm208_vm3, %v1133_v17  ;;  %1853 = vmatpush3.bf16.msra.mxu1 %v2082_v7  ;;  %v172_v7 = vadd.f32 %v2106_v12, %v2218_v62 }
0x1050   :  { %1841 = vmatpush3.bf16.msra.mxu0 %v2133_v36  ;;  %1854 = vmatprep.subr.bf16.mxu1 %v2007_v1 }
0x1051   :  { %1842 = vmatprep.subr.bf16.mxu0 %v2007_v1  ;;  %1848 = vmatprep.mubr.msk.bf16.mxu0 %vm2008_vm2, %v2007_v1 }
0x1052   :  { %1856 = vmatprep.mubr.msk.bf16.mxu1 %vm2008_vm2, %v2007_v1 }
0x1053   :  { %1855 = vmatpush3.bf16.msra.mxu1 %v2090_v9 }
0x1054   :  { %1843 = vmatpush3.bf16.msra.mxu0 %v2144_v39  ;;  %1860 = vmatprep.subr.bf16.mxu1 %v2007_v1 }
0x1055   :  { %1844 = vmatprep.subr.bf16.mxu0 %v2007_v1 }
0x1058   :  { %1845 = vmatpush3.bf16.msra.mxu0 %v2162_v45 }
0x1059   :  { %1846 = vmatprep.subr.bf16.mxu0 %v2007_v1 }
0x105c   :  { %1847 = vmatpush3.bf16.msra.mxu0 %v2176_v48 }
0x110e   :  { %v1094_v19 = vpop.f32.mrf.mxu1 }
0x110f   :  { %v1095_v20 = vadd.f32 %v2223_v63, %v1094_v19  ;;  %v1171_v21 = vpop.f32.mrf.mxu0 }
0x1110   :  { %v1177_v9 = vadd.f32 %v1171_v21, %v172_v7  ;;  %v1830_v22 = vpop.f32.mrf.mxu1 }
0x1111   :  { %1966 = vtanh.f32 %v1095_v20  ;;  %v1838_v24 = vpop.f32.mrf.mxu0  ;;  %v1580_v12 = vmul.f32 -1.442695, %v1095_v20 }
0x1112   :  { %1968 = vtanh.f32 %v1177_v9  ;;  %v1097_v25 = vpop.f32.mrf.mxu1  ;;  %v1582_v62 = vmul.f32 -1.442695, %v1177_v9 }
0x1113   :  { %v1174_v23 = vpop.f32.mrf.mxu0  ;;  %1970 = vpow2.f32 %v1580_v12 }
0x1114   :  { %v1831_v27 = vpop.f32.mrf.mxu1  ;;  %1972 = vpow2.f32 %v1582_v62 }
0x1115   :  { %v1839_v28 = vpop.f32.mrf.mxu0 }
0x111e   :  { %v1967_v30 = vpop.eup %1966 }
0x111f   :  { %v1969_v31 = vpop.eup %1968  ;;  %1109 = vrot.lane.b32.xlu0 %v1967_v30, %s2010_s19 }
0x1120   :  { %1187 = vrot.lane.b32.xlu1 %v1969_v31, %s2010_s19  ;;  %v1971_v33 = vpop.eup %1970 }
0x1121   :  { %v1973_v34 = vpop.eup %1972  ;;  %v1103_v35 = vadd.f32 1.0, %v1971_v33 }
0x1122   :  { %v1181_v37 = vadd.f32 1.0, %v1973_v34 }
0x1123   :  { %1974 = vrcp.f32 %v1103_v35 }
0x1124   :  { %1976 = vrcp.f32 %v1181_v37 }
0x1130   :  { %v1975_v38 = vpop.eup %1974 }
0x1131   :  { %v1977_v29 = vpop.eup %1976  ;;  %v1107_v44 = vmul.f32 %v1975_v38, %v2395_v0 }
0x1132   :  { %v1185_v47 = vmul.f32 %v1977_v29, %v2397_v3 }
0x1191   :  { %v1110_v40 = vpop.permute.xlu0 %1109 }
0x1192   :  { %v1112_v42 = vmul.f32 %v1975_v38, %v1110_v40  ;;  %v1188_v58 = vpop.permute.xlu1 %1187 }
0x1193   :  { %v1190_v43 = vmul.f32 %v1977_v29, %v1188_v58 }
0x1194   :  { %1114 = vrot.lane.b32.xlu0 %v1112_v42, %s2010_s19 }
0x1195   :  { %1192 = vrot.lane.b32.xlu1 %v1190_v43, %s2010_s19 }
0x1206   :  { %v1115_v46 = vpop.permute.xlu0 %1114 }
0x1207   :  { %v2436_v49 = vadd.f32 %v1115_v46, %v1107_v44  ;;  %v1193_v50 = vpop.permute.xlu1 %1192 }
0x1208   :  { %v2438_v59 = vadd.f32 %v1193_v50, %v1185_v47 }
0x1209   :  { %1978 = vtanh.f32 %v2436_v49 }
0x120a   :  { %1980 = vtanh.f32 %v2438_v59 }
0x1216   :  { %v1979_v51 = vpop.eup %1978 }
0x1217   :  { %v1981_v52 = vpop.eup %1980  ;;  %1120 = vrot.lane.b32.xlu0 %v1979_v51, %s2010_s19 }
0x1218   :  { %1198 = vrot.lane.b32.xlu1 %v1981_v52, %s2010_s19 }
0x1289   :  { %v1121_v53 = vpop.permute.xlu0 %1120 }
0x128a   :  { %v1123_v54 = vmul.f32 %v1975_v38, %v1121_v53  ;;  %v1199_v55 = vpop.permute.xlu1 %1198 }
0x128b   :  { %v1201_v61 = vmul.f32 %v1977_v29, %v1199_v55 }
0x128c   :  { %1125 = vrot.lane.b32.xlu0 %v1123_v54, %s2012_s5 }
0x128d   :  { %v1277_v56 = vpack.c.bf16 %v1201_v61, %v1201_v61  ;;  %1203 = vrot.lane.b32.xlu1 %v1201_v61, %s2011_s0 }
0x1290   :  { %1279 = vrot.lane.b32.xlu0 %v1277_v56, %s2011_s0 }
0x12fe   :  { %v2447_v0 = vpop.permute.xlu0 %1125 }
0x12ff   :  { %v1204_v2 = vpop.permute.xlu1 %1203 }
0x1300   :  { %v1206_v3 = vsel %vm208_vm3, %v1204_v2, %v2447_v0 }
0x1301   :  { %v1207_v4 = vpack.c.bf16 %v1206_v3, %v1206_v3 }
0x1302   :  { %v1280_v5 = vpop.permute.xlu0 %1279 }
0x1303   :  { %1849 = vmatmul.mubr.msk.bf16.vlgmr.msra.gmra.mxu0 %vm289_vm4, %v1207_v4  ;;  %1857 = vmatmul.mubr.msk.bf16.vlgmr.msra.gmra.mxu1 %vm208_vm3, %v1280_v5 }
0x1304   :  { %1861 = vmatpush3.bf16.msra.mxu1 %v2133_v36  ;;  %1868 = vmatprep.mubr.msk.bf16.mxu1 %vm2008_vm2, %v2007_v1  ;;  %v177_v36 = vadd.f32 %v2006_v6, %v2214_v60  ;;  %v1464_v6 = vld [vmem:[%s2613_s6 + $0xf8] sm:$0xff] }
0x1305   :  { %1862 = vmatprep.subr.bf16.mxu1 %v2007_v1  ;;  %1663 = vmatprep.subr.mxu0 %v1464_v6 }
0x1308   :  { %1863 = vmatpush3.bf16.msra.mxu1 %v2144_v39 }
0x1309   :  { %1864 = vmatprep.subr.bf16.mxu1 %v2007_v1 }
0x130c   :  { %1865 = vmatpush3.bf16.msra.mxu1 %v2162_v45 }
0x130d   :  { %1866 = vmatprep.subr.bf16.mxu1 %v2007_v1 }
0x1310   :  { %1867 = vmatpush3.bf16.msra.mxu1 %v2176_v48 }
0x13c3   :  { %v1245_v10 = vpop.f32.mrf.mxu0  ;;  %v1318_v13 = vpop.f32.mrf.mxu1 }
0x13c4   :  { %v1246_v11 = vadd.f32 %v2223_v63, %v1245_v10  ;;  %v1324_v57 = vadd.f32 %v1318_v13, %v177_v36  ;;  %v1463_v36 = vld [vmem:[%s2613_s6 + $0xf0] sm:$0xff] }
0x13c5   :  { %v1850_v39 = vpop.f32.mrf.mxu0  ;;  %v1858_v14 = vpop.f32.mrf.mxu1  ;;  %v1447_v10 = vld [vmem:[%s2613_s6 + $0x70] sm:$0xff] }
0x13c6   :  { %1982 = vtanh.f32 %v1246_v11  ;;  %v1584_v60 = vmul.f32 -1.442695, %v1246_v11  ;;  %v1586_v7 = vmul.f32 -1.442695, %v1324_v57  ;;  %v1446_v11 = vld [vmem:[%s2613_s6 + $0x68] sm:$0xff]  ;;  %v1445_v39 = vld [vmem:[%s2613_s6 + $0x60] sm:$0xff] }
0x13c7   :  { %1984 = vtanh.f32 %v1324_v57  ;;  %v1248_v45 = vpop.f32.mrf.mxu0  ;;  %v1321_v15 = vpop.f32.mrf.mxu1  ;;  %v1461_v57 = vld [vmem:[%s2613_s6 + $0xe0] sm:$0xff]  ;;  %v1460_v14 = vld [vmem:[%s2613_s6 + $0xd8] sm:$0xff] }
0x13c8   :  { %1986 = vpow2.f32 %v1584_v60  ;;  %v1444_v45 = vld [vmem:[%s2613_s6 + $0x58] sm:$0xff]  ;;  %v1459_v15 = vld [vmem:[%s2613_s6 + $0xd0] sm:$0xff] }
0x13c9   :  { %v1851_v1 = vpop.f32.mrf.mxu0  ;;  %v1859_v16 = vpop.f32.mrf.mxu1  ;;  %1988 = vpow2.f32 %v1586_v7  ;;  %v1456_v60 = vld [vmem:[%s2613_s6 + $0xb8] sm:$0xff]  ;;  %v1455_v7 = vld [vmem:[%s2613_s6 + $0xb0] sm:$0xff] }
0x13ca   :  { %v1443_v1 = vld [vmem:[%s2613_s6 + $0x50] sm:$0xff]  ;;  %v1458_v16 = vld [vmem:[%s2613_s6 + $0xc8] sm:$0xff] }
0x13d3   :  { %v1983_v48 = vpop.eup %1982 }
0x13d4   :  { %v1985_v17 = vpop.eup %1984  ;;  %1260 = vrot.lane.b32.xlu1 %v1983_v48, %s2010_s19  ;;  %v1457_v48 = vld [vmem:[%s2613_s6 + $0xc0] sm:$0xff] }
0x13d5   :  { %1334 = vrot.lane.b32.xlu0 %v1985_v17, %s2010_s19  ;;  %v1987_v19 = vpop.eup %1986  ;;  %v1441_v17 = vld [vmem:[%s2613_s6 + $0x40] sm:$0xff] }
0x13d6   :  { %v1989_v20 = vpop.eup %1988  ;;  %v1254_v21 = vadd.f32 1.0, %v1987_v19  ;;  %v1439_v19 = vld [vmem:[%s2613_s6 + $0x30] sm:$0xff] }
0x13d7   :  { %v1328_v9 = vadd.f32 1.0, %v1989_v20  ;;  %v1454_v20 = vld [vmem:[%s2613_s6 + $0xa8] sm:$0xff] }
0x13d8   :  { %1990 = vrcp.f32 %v1254_v21  ;;  %v1438_v21 = vld [vmem:[%s2613_s6 + $0x28] sm:$0xff] }
0x13d9   :  { %1992 = vrcp.f32 %v1328_v9  ;;  %v1453_v9 = vld [vmem:[%s2613_s6 + $0xa0] sm:$0xff] }
0x13e5   :  { %v1991_v22 = vpop.eup %1990 }
0x13e6   :  { %v1993_v25 = vpop.eup %1992  ;;  %v1258_v30 = vmul.f32 %v1991_v22, %v2436_v49 }
0x13e7   :  { %v1332_v12 = vmul.f32 %v1993_v25, %v2438_v59 }
0x1446   :  { %v1261_v24 = vpop.permute.xlu1 %1260 }
0x1447   :  { %v1263_v23 = vmul.f32 %v1991_v22, %v1261_v24  ;;  %v1335_v27 = vpop.permute.xlu0 %1334  ;;  %v1452_v24 = vld [vmem:[%s2613_s6 + $0x98] sm:$0xff] }
0x1448   :  { %v1337_v28 = vmul.f32 %v1993_v25, %v1335_v27  ;;  %v1435_v27 = vld [vmem:[%s2613_s6 + $0x10] sm:$0xff] }
0x1449   :  { %1265 = vrot.lane.b32.xlu1 %v1263_v23, %s2010_s19  ;;  %v1451_v23 = vld [vmem:[%s2613_s6 + $0x90] sm:$0xff] }
0x144a   :  { %1339 = vrot.lane.b32.xlu0 %v1337_v28, %s2010_s19  ;;  %v1450_v28 = vld [vmem:[%s2613_s6 + $0x88] sm:$0xff] }
0x14bb   :  { %v1266_v31 = vpop.permute.xlu1 %1265 }
0x14bc   :  { %v1268_v62 = vadd.f32 %v1266_v31, %v1258_v30  ;;  %v1340_v33 = vpop.permute.xlu0 %1339  ;;  %v1434_v30 = vld [vmem:[%s2613_s6 + $0x8] sm:$0xff]  ;;  %v1449_v31 = vld [vmem:[%s2613_s6 + $0x80] sm:$0xff] }
0x14bd   :  { %v1342_v34 = vadd.f32 %v1340_v33, %v1332_v12  ;;  %v1433_v12 = vld [vmem:[%s2613_s6] sm:$0xff] }
0x14be   :  { %1994 = vtanh.f32 %v1268_v62 }
0x14bf   :  { %1996 = vtanh.f32 %v1342_v34 }
0x14cb   :  { %v1995_v35 = vpop.eup %1994 }
0x14cc   :  { %v1997_v37 = vpop.eup %1996  ;;  %1271 = vrot.lane.b32.xlu1 %v1995_v35, %s2010_s19 }
0x14cd   :  { %1345 = vrot.lane.b32.xlu0 %v1997_v37, %s2010_s19 }
0x153e   :  { %v1272_v38 = vpop.permute.xlu1 %1271 }
0x153f   :  { %v1274_v40 = vmul.f32 %v1991_v22, %v1272_v38  ;;  %v1346_v29 = vpop.permute.xlu0 %1345  ;;  %v1437_v22 = vld [vmem:[%s2613_s6 + $0x20] sm:$0xff] }
0x1540   :  { %v1348_v42 = vmul.f32 %v1993_v25, %v1346_v29  ;;  %v1436_v25 = vld [vmem:[%s2613_s6 + $0x18] sm:$0xff] }
0x1541   :  { %1354 = vrot.lane.b32.xlu0 %v1274_v40, %s2012_s5 }
0x1542   :  { %1350 = vrot.lane.b32.xlu1 %v1348_v42, %s2011_s0  ;;  %v1589_v42 = vld [vmem:[%s2614_s7] ss:$0 sm:$0xff] }
0x15b3   :  { %v1355_v58 = vpop.permute.xlu0 %1354 }
0x15b4   :  { %v1351_v43 = vpop.permute.xlu1 %1350 }
0x15b5   :  { %v1357_v44 = vsel %vm208_vm3, %v1351_v43, %v1355_v58 }
0x15b6   :  { %v1358_v46 = vpack.c.bf16 %v1357_v44, %v1357_v44 }
0x15b8   :  { %1869 = vmatmul.mubr.msk.bf16.vlgmr.msra.gmra.mxu1 %vm289_vm4, %v1358_v46 }
0x1678   :  { %v1396_v47 = vpop.f32.mrf.mxu1 }
0x1679   :  { %v1397_v49 = vadd.f32 %v2223_v63, %v1396_v47 }
0x167a   :  { %v1870_v50 = vpop.f32.mrf.mxu1 }
0x167b   :  { %1998 = vtanh.f32 %v1397_v49  ;;  %v1588_v53 = vmul.f32 -1.442695, %v1397_v49 }
0x167c   :  { %v1399_v59 = vpop.f32.mrf.mxu1 }
0x167d   :  { %2000 = vpow2.f32 %v1588_v53 }
0x167e   :  { %v1871_v51 = vpop.f32.mrf.mxu1 }
0x1688   :  { %v1999_v52 = vpop.eup %1998 }
0x1689   :  { %1411 = vrot.lane.b32.xlu1 %v1999_v52, %s2010_s19 }
0x168a   :  { %v2001_v54 = vpop.eup %2000 }
0x168b   :  { %v1405_v55 = vadd.f32 1.0, %v2001_v54 }
0x168d   :  { %2002 = vrcp.f32 %v1405_v55 }
0x169a   :  { %v2481_v61 = vpop.eup %2002 }
0x169b   :  { %v1409_v63 = vmul.f32 %v2481_v61, %v1268_v62 }
0x16fb   :  { %v1412_v56 = vpop.permute.xlu1 %1411 }
0x16fc   :  { %v1414_v2 = vmul.f32 %v2481_v61, %v1412_v56 }
0x16fe   :  { %1416 = vrot.lane.b32.xlu0 %v1414_v2, %s2010_s19 }
0x1702   :  { %971 = vrot.lane.b32.xlu0 %v2403_v8, %s2011_s0  ;;  %v1448_v8 = vld [vmem:[%s2613_s6 + $0x78] sm:$0xff] }
0x1703   :  { %1664 = vmatpush3.msra.mxu0 %v1448_v8 }
0x1704   :  { %1665 = vmatprep.subr.mxu0 %v1463_v36 }
0x1705   :  { %1666 = vmatpush3.msra.mxu0 %v1447_v10 }
0x1770   :  { %v1417_v3 = vpop.permute.xlu0 %1416 }
0x1771   :  { %v1419_v4 = vadd.f32 %v1417_v3, %v1409_v63 }
0x1773   :  { %2004 = vtanh.f32 %v1419_v4 }
0x1774   :  { %v972_v5 = vpop.permute.xlu0 %971 }
0x1775   :  { %974 = vst.msk [vmem:[#allocation3 + $0x8] sm:$0xff] %vm208_vm3, %v972_v5 }
0x1776   :  { %1128 = vst.msk [vmem:[#allocation3 + $0x8] sm:$0xff] %vm515_vm5, %v2447_v0  ;;  %v1462_v0 = vld [vmem:[%s2613_s6 + $0xe8] sm:$0xff] }
0x1777   :  { %1275 = vst.msk [vmem:[#allocation3 + $0x8] sm:$0xff] %vm663_vm6, %v1274_v40  ;;  %1667 = vmatprep.subr.mxu0 %v1462_v0 }
0x1778   :  { %1668 = vmatpush3.msra.mxu0 %v1446_v11 }
0x1779   :  { %1669 = vmatprep.subr.mxu0 %v1461_v57 }
0x177a   :  { %1670 = vmatpush3.msra.mxu0 %v1445_v39 }
0x177b   :  { %1671 = vmatprep.subr.mxu0 %v1460_v14 }
0x177c   :  { %1672 = vmatpush3.msra.mxu0 %v1444_v45 }
0x177d   :  { %1673 = vmatprep.subr.mxu0 %v1459_v15 }
0x177e   :  { %1674 = vmatpush3.msra.mxu0 %v1443_v1 }
0x177f   :  { %1675 = vmatprep.subr.mxu0 %v1458_v16 }
0x1780   :  { %v2005_v13 = vpop.eup %2004 }
0x1781   :  { %1422 = vrot.lane.b32.xlu1 %v2005_v13, %s2010_s19 }
0x1785   :  { %358 = vrot.lane.b32.xlu1 %v2239_v41, %s2011_s0  ;;  %v1442_v41 = vld [vmem:[%s2613_s6 + $0x48] sm:$0xff] }
0x1786   :  { %1676 = vmatpush3.msra.mxu0 %v1442_v41 }
0x1787   :  { %1677 = vmatprep.subr.mxu0 %v1457_v48 }
0x1788   :  { %1678 = vmatpush3.msra.mxu0 %v1441_v17 }
0x1789   :  { %816 = vrot.lane.b32.xlu1 %v2361_v18, %s2010_s19  ;;  %v1440_v18 = vld [vmem:[%s2613_s6 + $0x38] sm:$0xff]  ;;  %1679 = vmatprep.subr.mxu0 %v1456_v60 }
0x178a   :  { %1680 = vmatpush3.msra.mxu0 %v1440_v18 }
0x178b   :  { %1681 = vmatprep.subr.mxu0 %v1455_v7 }
0x178c   :  { %1682 = vmatpush3.msra.mxu0 %v1439_v19 }
0x178d   :  { %1683 = vmatprep.subr.mxu0 %v1454_v20 }
0x178e   :  { %1684 = vmatpush3.msra.mxu0 %v1438_v21 }
0x178f   :  { %1685 = vmatprep.subr.mxu0 %v1453_v9 }
0x1790   :  { %1686 = vmatpush3.msra.mxu0 %v1437_v22 }
0x1791   :  { %1687 = vmatprep.subr.mxu0 %v1452_v24 }
0x1792   :  { %1688 = vmatpush3.msra.mxu0 %v1436_v25 }
0x1793   :  { %1689 = vmatprep.subr.mxu0 %v1451_v23 }
0x1794   :  { %1690 = vmatpush3.msra.mxu0 %v1435_v27 }
0x1795   :  { %1691 = vmatprep.subr.mxu0 %v1450_v28 }
0x1796   :  { %1692 = vmatpush3.msra.mxu0 %v1434_v30 }
0x1797   :  { %1693 = vmatprep.subr.mxu0 %v1449_v31 }
0x1798   :  { %1694 = vmatpush3.msra.mxu0 %v1433_v12 }
0x17f3   :  { %v1423_v62 = vpop.permute.xlu1 %1422 }
0x17f4   :  { %v1425_v33 = vmul.f32 %v2481_v61, %v1423_v62 }
0x17f6   :  { %1427 = vrot.lane.b32.xlu0 %v1425_v33, %s2010_s19 }
0x17f7   :  { %v359_v34 = vpop.permute.xlu1 %358 }
0x17f8   :  { %361 = vst.msk [vmem:[#allocation3] sm:$0xff] %vm208_vm3, %v359_v34 }
0x17f9   :  { %516 = vst.msk [vmem:[#allocation3] sm:$0xff] %vm515_vm5, %v2280_v32 }
0x17fa   :  { %664 = vst.msk [vmem:[#allocation3] sm:$0xff] %vm663_vm6, %v2319_v26 }
0x17fb   :  { %v817_v35 = vpop.permute.xlu1 %816 }
0x17fc   :  { %820 = vst.msk [vmem:[#allocation3] sm:$0xff] %vm819_vm7, %v817_v35 }
0x1803   :  { %v1431_v40 = vld [vmem:[#allocation3] sm:$0xff] }
0x1868   :  { %v1428_v37 = vpop.permute.xlu0 %1427 }
0x1869   :  { %1430 = vst.msk [vmem:[#allocation3 + $0x8] sm:$0xff] %vm819_vm7, %v1428_v37 }
0x1870   :  { %v1432_v38 = vld [vmem:[#allocation3 + $0x8] sm:$0xff] }
0x1871   :  { %1536 = vmatprep.mubr.f32.mxu0 %v1432_v38 }
0x1872   :  { %1537 = vmatmul.mubr.f32.vlgmr.msra.gmra.mxu0 %v1431_v40 }
0x1932   :  { %v1695_v29 = vpop.f32.mrf.mxu0 }
0x1934   :  { %v1696_v58 = vpop.f32.mrf.mxu0 }
0x1935   :  { %v1697_v43 = vadd.f32 %v1696_v58, %v1695_v29 }
0x1937   :  { %v1539_v32 = vadd.f32 %v1697_v43, %v1589_v42 }
0x1939   :  { %1542 = vst.msk [vmem:[%s2615_s8] sm:$0xff] %vm46_vm1, %v1539_v32 }

</bundles_post_ra>
